<compile_context>
chip_gen: v7x
topology: tpu7x:2x2x1
jax: 0.10.0
libtpu: 0.0.40
codegen_flags: <defaults>
</compile_context>

<pallas_src>
import jax
import jax.numpy as jnp
import numpy as np
from jax.experimental import pallas as pl
from jax.experimental.pallas import tpu as pltpu

# ---------------- model dims (from the PyTorch module) ----------------
D_BERT = 768          # bert hidden size / conv1 in_channels
D_CONV = 128          # conv1 out_channels
D_LSTM = 64           # lstm hidden size
N_GATE = 4 * D_LSTM   # 256 = i,f,g,o gates
N_CLS = 2             # fc out_features
N_CLS_PAD = 128       # lane-dense padded logits width

# ---------------- small demo shapes ----------------
BATCH = 2
SEQ = 8
VOCAB = 64


# =====================================================================
# Fused kernel: (folded conv1+Wih) gate projection  ->  LSTM recurrence
#               -> fc on the final hidden state.
# x rows are time-major: row r = t*B + b.
# =====================================================================
def fused_conv_lstm_fc_kernel(x_ref, wg_ref, bg_ref, whh_ref, wfc_ref, bfc_ref,
                              out_ref, gates_scr):
    # x_ref:     (L*B, 768)   bf16
    # wg_ref:    (3, 768, 256) bf16   folded conv-tap -> gate weights
    # bg_ref:    (1, 256)     f32     folded bias
    # whh_ref:   (64, 256)    bf16    recurrent weights (transposed, i|f|g|o)
    # wfc_ref:   (64, 128)    f32     fc weight, padded to 128 lanes
    # bfc_ref:   (1, 128)     f32
    # out_ref:   (B, 128)     f32     padded logits (cols >= 2 are zero-weighted)
    # gates_scr: (L*B, 256)   f32     precomputed input-side gate activations
    R = x_ref.shape[0]
    B = out_ref.shape[0]
    L = R // B
    H = whh_ref.shape[0]

    x = x_ref[...]
    # --- input-side gate projection for ALL timesteps (3 taps, bf16 -> f32) ---
    y0 = jnp.dot(x, wg_ref[0], preferred_element_type=jnp.float32)  # needs x[t-1]
    y1 = jnp.dot(x, wg_ref[1], preferred_element_type=jnp.float32)  # needs x[t]
    y2 = jnp.dot(x, wg_ref[2], preferred_element_type=jnp.float32)  # needs x[t+1]

    # Shift tap results by one timestep (= B rows in time-major layout) using the
    # XLU roll, zero-masking the wrapped rows (== the zero padding of the conv).
    row = jax.lax.broadcasted_iota(jnp.int32, (R, N_GATE), 0)
    y0s = jnp.where(row >= B, pltpu.roll(y0, shift=B, axis=0), 0.0)
    y2s = jnp.where(row < R - B, pltpu.roll(y2, shift=R - B, axis=0), 0.0)

    # single full-tile, lane-dense store of the combined gates
    gates_scr[...] = y1 + y0s + y2s + bg_ref[...]

    whh = whh_ref[...]

    # --- LSTM recurrence: tiny per-step work, so an in-kernel loop (no grid) ---
    def step(t, carry):
        h, c = carry
        gx = gates_scr[pl.ds(t * B, B), :]                          # (B, 256)
        gates = gx + jnp.dot(h.astype(jnp.bfloat16), whh,
                             preferred_element_type=jnp.float32)
        i = jax.nn.sigmoid(gates[:, 0:H])
        f = jax.nn.sigmoid(gates[:, H:2 * H])
        g = jnp.tanh(gates[:, 2 * H:3 * H])
        o = jax.nn.sigmoid(gates[:, 3 * H:4 * H])
        c = f * c + i * g
        h = o * jnp.tanh(c)
        return h, c

    h0 = jnp.zeros((B, H), jnp.float32)
    c0 = jnp.zeros((B, H), jnp.float32)
    h_fin, _ = jax.lax.fori_loop(0, L, step, (h0, c0), unroll=True)

    # --- fused fc, lane-dense padded output (one full-tile store) ---
    out_ref[...] = (jnp.dot(h_fin, wfc_ref[...],
                            preferred_element_type=jnp.float32) + bfc_ref[...])


def fused_conv_lstm_fc(x_rows, w_gate, b_gate, whh, wfc_pad, bfc_pad, *, batch):
    R, D = x_rows.shape
    return pl.pallas_call(
        fused_conv_lstm_fc_kernel,
        out_shape=jax.ShapeDtypeStruct((batch, N_CLS_PAD), jnp.float32),
        grid=(1,),
        in_specs=[
            pl.BlockSpec((R, D), lambda i: (0, 0)),
            pl.BlockSpec((3, D, N_GATE), lambda i: (0, 0, 0)),
            pl.BlockSpec((1, N_GATE), lambda i: (0, 0)),
            pl.BlockSpec((D_LSTM, N_GATE), lambda i: (0, 0)),
            pl.BlockSpec((D_LSTM, N_CLS_PAD), lambda i: (0, 0)),
            pl.BlockSpec((1, N_CLS_PAD), lambda i: (0, 0)),
        ],
        out_specs=pl.BlockSpec((batch, N_CLS_PAD), lambda i: (0, 0)),
        scratch_shapes=[pltpu.VMEM((R, N_GATE), jnp.float32)],
        compiler_params=pltpu.CompilerParams(
            dimension_semantics=("arbitrary",)),
    )(x_rows, w_gate, b_gate, whh, wfc_pad, bfc_pad)


# =====================================================================
# Parameter init (deterministic, shapes from the nn.Module __init__),
# with the conv->gate folding done once at parameter-build time.
# =====================================================================
def init_params(key):
    ks = jax.random.split(key, 9)
    s = 0.05
    hp = jax.lax.Precision.HIGHEST
    # nn.Conv1d(768, 128, 3, padding=1): weight (128, 768, 3), bias (128,)
    w_conv = jax.random.normal(ks[0], (D_CONV, D_BERT, 3), jnp.float32) * s
    b_conv = jax.random.normal(ks[1], (D_CONV,), jnp.float32) * s
    # nn.LSTM(128, 64): weight_ih (256,128), weight_hh (256,64), biases (256,)
    w_ih = jax.random.normal(ks[2], (4 * D_LSTM, D_CONV), jnp.float32) * s
    w_hh = jax.random.normal(ks[3], (4 * D_LSTM, D_LSTM), jnp.float32) * s
    b_ih = jax.random.normal(ks[4], (4 * D_LSTM,), jnp.float32) * s
    b_hh = jax.random.normal(ks[5], (4 * D_LSTM,), jnp.float32) * s
    # nn.Linear(64, 2): weight (2, 64), bias (2,)
    w_fc = jax.random.normal(ks[6], (N_CLS, D_LSTM), jnp.float32) * s
    b_fc = jax.random.normal(ks[7], (N_CLS,), jnp.float32) * s
    # stub BERT embedding table
    emb = jax.random.normal(ks[8], (VOCAB, D_BERT), jnp.float32) * 0.1

    wih_t = w_ih.T                                               # (128, 256)
    # conv weights as per-tap (CIN, COUT) operands, then folded through Wih
    w_tap = jnp.stack([w_conv[:, :, k].T for k in range(3)], 0)  # (3, 768, 128)
    w_gate = jnp.einsum("kdc,cg->kdg", w_tap, wih_t, precision=hp)  # (3, 768, 256)
    b_gate = (jnp.dot(b_conv, wih_t, precision=hp) + b_ih + b_hh)[None, :]  # (1,256)

    wfc_pad = jnp.zeros((D_LSTM, N_CLS_PAD), jnp.float32).at[:, :N_CLS].set(w_fc.T)
    bfc_pad = jnp.zeros((1, N_CLS_PAD), jnp.float32).at[0, :N_CLS].set(b_fc)

    return {
        "w_gate": w_gate.astype(jnp.bfloat16),   # bf16 MXU operand
        "b_gate": b_gate,                        # f32
        "whh": w_hh.T.astype(jnp.bfloat16),      # (64, 256) bf16
        "wfc_pad": wfc_pad,                      # (64, 128) f32
        "bfc_pad": bfc_pad,                      # (1, 128) f32
        "emb": emb,
    }


def forward(params, input_ids, attention_mask):
    B, L = input_ids.shape
    # TODO(synk): the pretrained IndoBERT encoder (frozen, torch.no_grad) is not
    # reproduced; a deterministic embedding-lookup stub supplies last_hidden_state.
    # The gather is done directly in time-major (L, B, 768) layout so no extra
    # HBM transpose is needed between the stub and the kernel.
    last_hidden_tb = (params["emb"][input_ids.T]
                      * attention_mask.T[:, :, None].astype(jnp.float32))
    x_rows = last_hidden_tb.reshape(L * B, D_BERT).astype(jnp.bfloat16)
    logits_pad = fused_conv_lstm_fc(x_rows, params["w_gate"], params["b_gate"],
                                    params["whh"], params["wfc_pad"],
                                    params["bfc_pad"], batch=B)
    return logits_pad[:, :N_CLS]                  # (B, 2) f32


# Pure-JAX reference of the same math (mirrors the kernel's bf16 operand
# rounding so only accumulation-order / transcendental differences remain).
def reference(params, input_ids, attention_mask):
    hp = jax.lax.Precision.HIGHEST
    x = params["emb"][input_ids] * attention_mask[:, :, None].astype(jnp.float32)
    x = x.astype(jnp.bfloat16).astype(jnp.float32)
    B, L, _ = x.shape
    wg = params["w_gate"].astype(jnp.float32)                    # (3, 768, 256)
    xp = jnp.pad(x, ((0, 0), (1, 1), (0, 0)))
    gates_x = (jnp.einsum("bld,dg->blg", xp[:, 0:L], wg[0], precision=hp)
               + jnp.einsum("bld,dg->blg", xp[:, 1:L + 1], wg[1], precision=hp)
               + jnp.einsum("bld,dg->blg", xp[:, 2:L + 2], wg[2], precision=hp)
               + params["b_gate"])
    whh = params["whh"].astype(jnp.float32)
    H = D_LSTM
    h = jnp.zeros((B, H), jnp.float32)
    c = jnp.zeros((B, H), jnp.float32)
    for t in range(L):
        g_all = gates_x[:, t] + jnp.dot(
            h.astype(jnp.bfloat16).astype(jnp.float32), whh, precision=hp)
        i = jax.nn.sigmoid(g_all[:, 0:H])
        f = jax.nn.sigmoid(g_all[:, H:2 * H])
        g = jnp.tanh(g_all[:, 2 * H:3 * H])
        o = jax.nn.sigmoid(g_all[:, 3 * H:4 * H])
        c = f * c + i * g
        h = o * jnp.tanh(c)
    return (jnp.dot(h, params["wfc_pad"], precision=hp)
            + params["bfc_pad"])[:, :N_CLS]


if __name__ == "__main__":
    key = jax.random.PRNGKey(0)
    k_par, k_ids = jax.random.split(key)
    params = init_params(k_par)

    input_ids = jax.random.randint(k_ids, (BATCH, SEQ), 0, VOCAB, dtype=jnp.int32)
    attention_mask = jnp.ones((BATCH, SEQ), jnp.int32).at[1, SEQ - 2:].set(0)

    logits = jax.block_until_ready(forward(params, input_ids, attention_mask))
    ref = jax.block_until_ready(reference(params, input_ids, attention_mask))
    np.testing.assert_allclose(np.asarray(logits), np.asarray(ref),
                               rtol=2e-3, atol=2e-3)

    assert logits.shape == (BATCH, N_CLS) and logits.dtype == jnp.float32
    print("KERNEL_OK")
</pallas_src>

<mosaic_0001>
module attributes {stable_mosaic.version = 11 : i64} {
  func.func @fused_conv_lstm_fc_kernel(%arg0: i32, %arg1: memref<16x768xbf16, #tpu.memory_space<vmem>>, %arg2: memref<3x768x256xbf16, #tpu.memory_space<vmem>>, %arg3: memref<1x256xf32, #tpu.memory_space<vmem>>, %arg4: memref<64x256xbf16, #tpu.memory_space<vmem>>, %arg5: memref<64x128xf32, #tpu.memory_space<vmem>>, %arg6: memref<1x128xf32, #tpu.memory_space<vmem>>, %arg7: memref<2x128xf32, #tpu.memory_space<vmem>>, %arg8: memref<16x256xf32, #tpu.memory_space<vmem>>) attributes {dimension_semantics = [#tpu.dimension_semantics<arbitrary>], iteration_bounds = array<i64: 1>, scalar_prefetch = 0 : i64, scratch_operands = 1 : i64, tpu.core_type = #tpu.core_type<tc>, window_params = [{pipeline_mode = #tpu.pipeline_mode<synchronous>, transform_indices = @transform_0, window_bounds = array<i64: 16, 768>}, {pipeline_mode = #tpu.pipeline_mode<synchronous>, transform_indices = @transform_1, window_bounds = array<i64: 3, 768, 256>}, {pipeline_mode = #tpu.pipeline_mode<synchronous>, transform_indices = @transform_2, window_bounds = array<i64: 1, 256>}, {pipeline_mode = #tpu.pipeline_mode<synchronous>, transform_indices = @transform_3, window_bounds = array<i64: 64, 256>}, {pipeline_mode = #tpu.pipeline_mode<synchronous>, transform_indices = @transform_4, window_bounds = array<i64: 64, 128>}, {pipeline_mode = #tpu.pipeline_mode<synchronous>, transform_indices = @transform_5, window_bounds = array<i64: 1, 128>}, {pipeline_mode = #tpu.pipeline_mode<synchronous>, transform_indices = @transform_6, window_bounds = array<i64: 2, 128>}]} {
    %c0 = arith.constant 0 : index
    %c0_0 = arith.constant 0 : index
    %0 = vector.load %arg1[%c0, %c0_0] : memref<16x768xbf16, #tpu.memory_space<vmem>>, vector<16x768xbf16>
    %c0_1 = arith.constant 0 : index
    %c0_2 = arith.constant 0 : index
    %c0_3 = arith.constant 0 : index
    %1 = vector.load %arg2[%c0_1, %c0_2, %c0_3] : memref<3x768x256xbf16, #tpu.memory_space<vmem>>, vector<1x768x256xbf16>
    %2 = vector.shape_cast %1 : vector<1x768x256xbf16> to vector<768x256xbf16>
    %cst = arith.constant dense<0.000000e+00> : vector<16x256xf32>
    %3 = tpu.matmul %0, %2, %cst {dimension_numbers = #tpu.dot_dimension_numbers<[1], [0], [0], [1], [0, 0, 1, 1], [], []>} : vector<16x768xbf16>, vector<768x256xbf16>, vector<16x256xf32> -> vector<16x256xf32>
    %c1 = arith.constant 1 : index
    %c0_4 = arith.constant 0 : index
    %c0_5 = arith.constant 0 : index
    %4 = vector.load %arg2[%c1, %c0_4, %c0_5] : memref<3x768x256xbf16, #tpu.memory_space<vmem>>, vector<1x768x256xbf16>
    %5 = vector.shape_cast %4 : vector<1x768x256xbf16> to vector<768x256xbf16>
    %cst_6 = arith.constant dense<0.000000e+00> : vector<16x256xf32>
    %6 = tpu.matmul %0, %5, %cst_6 {dimension_numbers = #tpu.dot_dimension_numbers<[1], [0], [0], [1], [0, 0, 1, 1], [], []>} : vector<16x768xbf16>, vector<768x256xbf16>, vector<16x256xf32> -> vector<16x256xf32>
    %c2 = arith.constant 2 : index
    %c0_7 = arith.constant 0 : index
    %c0_8 = arith.constant 0 : index
    %7 = vector.load %arg2[%c2, %c0_7, %c0_8] : memref<3x768x256xbf16, #tpu.memory_space<vmem>>, vector<1x768x256xbf16>
    %8 = vector.shape_cast %7 : vector<1x768x256xbf16> to vector<768x256xbf16>
    %cst_9 = arith.constant dense<0.000000e+00> : vector<16x256xf32>
    %9 = tpu.matmul %0, %8, %cst_9 {dimension_numbers = #tpu.dot_dimension_numbers<[1], [0], [0], [1], [0, 0, 1, 1], [], []>} : vector<16x768xbf16>, vector<768x256xbf16>, vector<16x256xf32> -> vector<16x256xf32>
    %10 = tpu.iota {dimensions = array<i32: 0>} : vector<16x256xi32>
    %c2_i32 = arith.constant 2 : i32
    %11 = vector.broadcast %c2_i32 : i32 to vector<16x256xi32>
    %12 = arith.cmpi sge, %10, %11 : vector<16x256xi32>
    %c2_i32_10 = arith.constant 2 : i32
    %13 = tpu.dynamic_rotate %3 by %c2_i32_10 dim 0 : vector<16x256xf32>, i32 -> vector<16x256xf32>
    %cst_11 = arith.constant 0.000000e+00 : f32
    %14 = vector.broadcast %cst_11 : f32 to vector<16x256xf32>
    %15 = arith.select %12, %13, %14 : vector<16x256xi1>, vector<16x256xf32>
    %c14_i32 = arith.constant 14 : i32
    %16 = vector.broadcast %c14_i32 : i32 to vector<16x256xi32>
    %17 = arith.cmpi slt, %10, %16 : vector<16x256xi32>
    %c14_i32_12 = arith.constant 14 : i32
    %18 = tpu.dynamic_rotate %9 by %c14_i32_12 dim 0 : vector<16x256xf32>, i32 -> vector<16x256xf32>
    %cst_13 = arith.constant 0.000000e+00 : f32
    %19 = vector.broadcast %cst_13 : f32 to vector<16x256xf32>
    %20 = arith.select %17, %18, %19 : vector<16x256xi1>, vector<16x256xf32>
    %21 = arith.addf %6, %15 : vector<16x256xf32>
    %22 = arith.addf %21, %20 : vector<16x256xf32>
    %c0_14 = arith.constant 0 : index
    %c0_15 = arith.constant 0 : index
    %23 = vector.load %arg3[%c0_14, %c0_15] : memref<1x256xf32, #tpu.memory_space<vmem>>, vector<1x256xf32>
    %24 = vector.broadcast %23 : vector<1x256xf32> to vector<16x256xf32>
    %25 = arith.addf %22, %24 : vector<16x256xf32>
    %c0_16 = arith.constant 0 : index
    %c0_17 = arith.constant 0 : index
    %26 = vector.load %arg8[%c0_16, %c0_17] : memref<16x256xf32, #tpu.memory_space<vmem>>, vector<16x256xf32>
    tpu.vector_store %arg8[%c0_16, %c0_17], %25 {strides = array<i32>} : memref<16x256xf32, #tpu.memory_space<vmem>>, vector<16x256xf32>,
    %c0_18 = arith.constant 0 : index
    %c0_19 = arith.constant 0 : index
    %27 = vector.load %arg4[%c0_18, %c0_19] : memref<64x256xbf16, #tpu.memory_space<vmem>>, vector<64x256xbf16>
    %cst_20 = arith.constant 0.000000e+00 : f32
    %28 = vector.broadcast %cst_20 : f32 to vector<2x64xf32>
    %cst_21 = arith.constant 0.000000e+00 : f32
    %29 = vector.broadcast %cst_21 : f32 to vector<2x64xf32>
    %c0_i32 = arith.constant 0 : i32
    %c2_i32_22 = arith.constant 2 : i32
    %30 = arith.muli %c0_i32, %c2_i32_22 : i32
    %31 = arith.index_cast %30 : i32 to index
    %c0_23 = arith.constant 0 : index
    %32 = vector.load %arg8[%31, %c0_23] : memref<16x256xf32, #tpu.memory_space<vmem>>, vector<2x256xf32>
    %33 = arith.truncf %28 : vector<2x64xf32> to vector<2x64xbf16>
    %cst_24 = arith.constant dense<0.000000e+00> : vector<2x256xf32>
    %34 = tpu.matmul %33, %27, %cst_24 {dimension_numbers = #tpu.dot_dimension_numbers<[1], [0], [0], [1], [0, 0, 1, 1], [], []>} : vector<2x64xbf16>, vector<64x256xbf16>, vector<2x256xf32> -> vector<2x256xf32>
    %35 = arith.addf %32, %34 : vector<2x256xf32>
    %36 = vector.extract_strided_slice %35 {offsets = [0, 0], sizes = [2, 64], strides = [1, 1]} : vector<2x256xf32> to vector<2x64xf32>
    %37 = arith.negf %36 : vector<2x64xf32>
    %38 = math.exp %37 : vector<2x64xf32>
    %cst_25 = arith.constant 1.000000e+00 : f32
    %39 = vector.broadcast %cst_25 : f32 to vector<2x64xf32>
    %40 = arith.addf %39, %38 : vector<2x64xf32>
    %41 = arith.divf %39, %40 : vector<2x64xf32>
    %42 = vector.extract_strided_slice %35 {offsets = [0, 64], sizes = [2, 64], strides = [1, 1]} : vector<2x256xf32> to vector<2x64xf32>
    %43 = arith.negf %42 : vector<2x64xf32>
    %44 = math.exp %43 : vector<2x64xf32>
    %cst_26 = arith.constant 1.000000e+00 : f32
    %45 = vector.broadcast %cst_26 : f32 to vector<2x64xf32>
    %46 = arith.addf %45, %44 : vector<2x64xf32>
    %47 = arith.divf %45, %46 : vector<2x64xf32>
    %48 = vector.extract_strided_slice %35 {offsets = [0, 128], sizes = [2, 64], strides = [1, 1]} : vector<2x256xf32> to vector<2x64xf32>
    %49 = math.tanh %48 : vector<2x64xf32>
    %50 = vector.extract_strided_slice %35 {offsets = [0, 192], sizes = [2, 64], strides = [1, 1]} : vector<2x256xf32> to vector<2x64xf32>
    %51 = arith.negf %50 : vector<2x64xf32>
    %52 = math.exp %51 : vector<2x64xf32>
    %cst_27 = arith.constant 1.000000e+00 : f32
    %53 = vector.broadcast %cst_27 : f32 to vector<2x64xf32>
    %54 = arith.addf %53, %52 : vector<2x64xf32>
    %55 = arith.divf %53, %54 : vector<2x64xf32>
    %56 = arith.mulf %47, %29 : vector<2x64xf32>
    %57 = arith.mulf %41, %49 : vector<2x64xf32>
    %58 = arith.addf %56, %57 : vector<2x64xf32>
    %59 = math.tanh %58 : vector<2x64xf32>
    %60 = arith.mulf %55, %59 : vector<2x64xf32>
    %c1_i32 = arith.constant 1 : i32
    %c2_i32_28 = arith.constant 2 : i32
    %61 = arith.muli %c1_i32, %c2_i32_28 : i32
    %62 = arith.index_cast %61 : i32 to index
    %c0_29 = arith.constant 0 : index
    %63 = vector.load %arg8[%62, %c0_29] : memref<16x256xf32, #tpu.memory_space<vmem>>, vector<2x256xf32>
    %64 = arith.truncf %60 : vector<2x64xf32> to vector<2x64xbf16>
    %cst_30 = arith.constant dense<0.000000e+00> : vector<2x256xf32>
    %65 = tpu.matmul %64, %27, %cst_30 {dimension_numbers = #tpu.dot_dimension_numbers<[1], [0], [0], [1], [0, 0, 1, 1], [], []>} : vector<2x64xbf16>, vector<64x256xbf16>, vector<2x256xf32> -> vector<2x256xf32>
    %66 = arith.addf %63, %65 : vector<2x256xf32>
    %67 = vector.extract_strided_slice %66 {offsets = [0, 0], sizes = [2, 64], strides = [1, 1]} : vector<2x256xf32> to vector<2x64xf32>
    %68 = arith.negf %67 : vector<2x64xf32>
    %69 = math.exp %68 : vector<2x64xf32>
    %cst_31 = arith.constant 1.000000e+00 : f32
    %70 = vector.broadcast %cst_31 : f32 to vector<2x64xf32>
    %71 = arith.addf %70, %69 : vector<2x64xf32>
    %72 = arith.divf %70, %71 : vector<2x64xf32>
    %73 = vector.extract_strided_slice %66 {offsets = [0, 64], sizes = [2, 64], strides = [1, 1]} : vector<2x256xf32> to vector<2x64xf32>
    %74 = arith.negf %73 : vector<2x64xf32>
    %75 = math.exp %74 : vector<2x64xf32>
    %cst_32 = arith.constant 1.000000e+00 : f32
    %76 = vector.broadcast %cst_32 : f32 to vector<2x64xf32>
    %77 = arith.addf %76, %75 : vector<2x64xf32>
    %78 = arith.divf %76, %77 : vector<2x64xf32>
    %79 = vector.extract_strided_slice %66 {offsets = [0, 128], sizes = [2, 64], strides = [1, 1]} : vector<2x256xf32> to vector<2x64xf32>
    %80 = math.tanh %79 : vector<2x64xf32>
    %81 = vector.extract_strided_slice %66 {offsets = [0, 192], sizes = [2, 64], strides = [1, 1]} : vector<2x256xf32> to vector<2x64xf32>
    %82 = arith.negf %81 : vector<2x64xf32>
    %83 = math.exp %82 : vector<2x64xf32>
    %cst_33 = arith.constant 1.000000e+00 : f32
    %84 = vector.broadcast %cst_33 : f32 to vector<2x64xf32>
    %85 = arith.addf %84, %83 : vector<2x64xf32>
    %86 = arith.divf %84, %85 : vector<2x64xf32>
    %87 = arith.mulf %78, %58 : vector<2x64xf32>
    %88 = arith.mulf %72, %80 : vector<2x64xf32>
    %89 = arith.addf %87, %88 : vector<2x64xf32>
    %90 = math.tanh %89 : vector<2x64xf32>
    %91 = arith.mulf %86, %90 : vector<2x64xf32>
    %c2_i32_34 = arith.constant 2 : i32
    %c2_i32_35 = arith.constant 2 : i32
    %92 = arith.muli %c2_i32_34, %c2_i32_35 : i32
    %93 = arith.index_cast %92 : i32 to index
    %c0_36 = arith.constant 0 : index
    %94 = vector.load %arg8[%93, %c0_36] : memref<16x256xf32, #tpu.memory_space<vmem>>, vector<2x256xf32>
    %95 = arith.truncf %91 : vector<2x64xf32> to vector<2x64xbf16>
    %cst_37 = arith.constant dense<0.000000e+00> : vector<2x256xf32>
    %96 = tpu.matmul %95, %27, %cst_37 {dimension_numbers = #tpu.dot_dimension_numbers<[1], [0], [0], [1], [0, 0, 1, 1], [], []>} : vector<2x64xbf16>, vector<64x256xbf16>, vector<2x256xf32> -> vector<2x256xf32>
    %97 = arith.addf %94, %96 : vector<2x256xf32>
    %98 = vector.extract_strided_slice %97 {offsets = [0, 0], sizes = [2, 64], strides = [1, 1]} : vector<2x256xf32> to vector<2x64xf32>
    %99 = arith.negf %98 : vector<2x64xf32>
    %100 = math.exp %99 : vector<2x64xf32>
    %cst_38 = arith.constant 1.000000e+00 : f32
    %101 = vector.broadcast %cst_38 : f32 to vector<2x64xf32>
    %102 = arith.addf %101, %100 : vector<2x64xf32>
    %103 = arith.divf %101, %102 : vector<2x64xf32>
    %104 = vector.extract_strided_slice %97 {offsets = [0, 64], sizes = [2, 64], strides = [1, 1]} : vector<2x256xf32> to vector<2x64xf32>
    %105 = arith.negf %104 : vector<2x64xf32>
    %106 = math.exp %105 : vector<2x64xf32>
    %cst_39 = arith.constant 1.000000e+00 : f32
    %107 = vector.broadcast %cst_39 : f32 to vector<2x64xf32>
    %108 = arith.addf %107, %106 : vector<2x64xf32>
    %109 = arith.divf %107, %108 : vector<2x64xf32>
    %110 = vector.extract_strided_slice %97 {offsets = [0, 128], sizes = [2, 64], strides = [1, 1]} : vector<2x256xf32> to vector<2x64xf32>
    %111 = math.tanh %110 : vector<2x64xf32>
    %112 = vector.extract_strided_slice %97 {offsets = [0, 192], sizes = [2, 64], strides = [1, 1]} : vector<2x256xf32> to vector<2x64xf32>
    %113 = arith.negf %112 : vector<2x64xf32>
    %114 = math.exp %113 : vector<2x64xf32>
    %cst_40 = arith.constant 1.000000e+00 : f32
    %115 = vector.broadcast %cst_40 : f32 to vector<2x64xf32>
    %116 = arith.addf %115, %114 : vector<2x64xf32>
    %117 = arith.divf %115, %116 : vector<2x64xf32>
    %118 = arith.mulf %109, %89 : vector<2x64xf32>
    %119 = arith.mulf %103, %111 : vector<2x64xf32>
    %120 = arith.addf %118, %119 : vector<2x64xf32>
    %121 = math.tanh %120 : vector<2x64xf32>
    %122 = arith.mulf %117, %121 : vector<2x64xf32>
    %c3_i32 = arith.constant 3 : i32
    %c2_i32_41 = arith.constant 2 : i32
    %123 = arith.muli %c3_i32, %c2_i32_41 : i32
    %124 = arith.index_cast %123 : i32 to index
    %c0_42 = arith.constant 0 : index
    %125 = vector.load %arg8[%124, %c0_42] : memref<16x256xf32, #tpu.memory_space<vmem>>, vector<2x256xf32>
    %126 = arith.truncf %122 : vector<2x64xf32> to vector<2x64xbf16>
    %cst_43 = arith.constant dense<0.000000e+00> : vector<2x256xf32>
    %127 = tpu.matmul %126, %27, %cst_43 {dimension_numbers = #tpu.dot_dimension_numbers<[1], [0], [0], [1], [0, 0, 1, 1], [], []>} : vector<2x64xbf16>, vector<64x256xbf16>, vector<2x256xf32> -> vector<2x256xf32>
    %128 = arith.addf %125, %127 : vector<2x256xf32>
    %129 = vector.extract_strided_slice %128 {offsets = [0, 0], sizes = [2, 64], strides = [1, 1]} : vector<2x256xf32> to vector<2x64xf32>
    %130 = arith.negf %129 : vector<2x64xf32>
    %131 = math.exp %130 : vector<2x64xf32>
    %cst_44 = arith.constant 1.000000e+00 : f32
    %132 = vector.broadcast %cst_44 : f32 to vector<2x64xf32>
    %133 = arith.addf %132, %131 : vector<2x64xf32>
    %134 = arith.divf %132, %133 : vector<2x64xf32>
    %135 = vector.extract_strided_slice %128 {offsets = [0, 64], sizes = [2, 64], strides = [1, 1]} : vector<2x256xf32> to vector<2x64xf32>
    %136 = arith.negf %135 : vector<2x64xf32>
    %137 = math.exp %136 : vector<2x64xf32>
    %cst_45 = arith.constant 1.000000e+00 : f32
    %138 = vector.broadcast %cst_45 : f32 to vector<2x64xf32>
    %139 = arith.addf %138, %137 : vector<2x64xf32>
    %140 = arith.divf %138, %139 : vector<2x64xf32>
    %141 = vector.extract_strided_slice %128 {offsets = [0, 128], sizes = [2, 64], strides = [1, 1]} : vector<2x256xf32> to vector<2x64xf32>
    %142 = math.tanh %141 : vector<2x64xf32>
    %143 = vector.extract_strided_slice %128 {offsets = [0, 192], sizes = [2, 64], strides = [1, 1]} : vector<2x256xf32> to vector<2x64xf32>
    %144 = arith.negf %143 : vector<2x64xf32>
    %145 = math.exp %144 : vector<2x64xf32>
    %cst_46 = arith.constant 1.000000e+00 : f32
    %146 = vector.broadcast %cst_46 : f32 to vector<2x64xf32>
    %147 = arith.addf %146, %145 : vector<2x64xf32>
    %148 = arith.divf %146, %147 : vector<2x64xf32>
    %149 = arith.mulf %140, %120 : vector<2x64xf32>
    %150 = arith.mulf %134, %142 : vector<2x64xf32>
    %151 = arith.addf %149, %150 : vector<2x64xf32>
    %152 = math.tanh %151 : vector<2x64xf32>
    %153 = arith.mulf %148, %152 : vector<2x64xf32>
    %c4_i32 = arith.constant 4 : i32
    %c2_i32_47 = arith.constant 2 : i32
    %154 = arith.muli %c4_i32, %c2_i32_47 : i32
    %155 = arith.index_cast %154 : i32 to index
    %c0_48 = arith.constant 0 : index
    %156 = vector.load %arg8[%155, %c0_48] : memref<16x256xf32, #tpu.memory_space<vmem>>, vector<2x256xf32>
    %157 = arith.truncf %153 : vector<2x64xf32> to vector<2x64xbf16>
    %cst_49 = arith.constant dense<0.000000e+00> : vector<2x256xf32>
    %158 = tpu.matmul %157, %27, %cst_49 {dimension_numbers = #tpu.dot_dimension_numbers<[1], [0], [0], [1], [0, 0, 1, 1], [], []>} : vector<2x64xbf16>, vector<64x256xbf16>, vector<2x256xf32> -> vector<2x256xf32>
    %159 = arith.addf %156, %158 : vector<2x256xf32>
    %160 = vector.extract_strided_slice %159 {offsets = [0, 0], sizes = [2, 64], strides = [1, 1]} : vector<2x256xf32> to vector<2x64xf32>
    %161 = arith.negf %160 : vector<2x64xf32>
    %162 = math.exp %161 : vector<2x64xf32>
    %cst_50 = arith.constant 1.000000e+00 : f32
    %163 = vector.broadcast %cst_50 : f32 to vector<2x64xf32>
    %164 = arith.addf %163, %162 : vector<2x64xf32>
    %165 = arith.divf %163, %164 : vector<2x64xf32>
    %166 = vector.extract_strided_slice %159 {offsets = [0, 64], sizes = [2, 64], strides = [1, 1]} : vector<2x256xf32> to vector<2x64xf32>
    %167 = arith.negf %166 : vector<2x64xf32>
    %168 = math.exp %167 : vector<2x64xf32>
    %cst_51 = arith.constant 1.000000e+00 : f32
    %169 = vector.broadcast %cst_51 : f32 to vector<2x64xf32>
    %170 = arith.addf %169, %168 : vector<2x64xf32>
    %171 = arith.divf %169, %170 : vector<2x64xf32>
    %172 = vector.extract_strided_slice %159 {offsets = [0, 128], sizes = [2, 64], strides = [1, 1]} : vector<2x256xf32> to vector<2x64xf32>
    %173 = math.tanh %172 : vector<2x64xf32>
    %174 = vector.extract_strided_slice %159 {offsets = [0, 192], sizes = [2, 64], strides = [1, 1]} : vector<2x256xf32> to vector<2x64xf32>
    %175 = arith.negf %174 : vector<2x64xf32>
    %176 = math.exp %175 : vector<2x64xf32>
    %cst_52 = arith.constant 1.000000e+00 : f32
    %177 = vector.broadcast %cst_52 : f32 to vector<2x64xf32>
    %178 = arith.addf %177, %176 : vector<2x64xf32>
    %179 = arith.divf %177, %178 : vector<2x64xf32>
    %180 = arith.mulf %171, %151 : vector<2x64xf32>
    %181 = arith.mulf %165, %173 : vector<2x64xf32>
    %182 = arith.addf %180, %181 : vector<2x64xf32>
    %183 = math.tanh %182 : vector<2x64xf32>
    %184 = arith.mulf %179, %183 : vector<2x64xf32>
    %c5_i32 = arith.constant 5 : i32
    %c2_i32_53 = arith.constant 2 : i32
    %185 = arith.muli %c5_i32, %c2_i32_53 : i32
    %186 = arith.index_cast %185 : i32 to index
    %c0_54 = arith.constant 0 : index
    %187 = vector.load %arg8[%186, %c0_54] : memref<16x256xf32, #tpu.memory_space<vmem>>, vector<2x256xf32>
    %188 = arith.truncf %184 : vector<2x64xf32> to vector<2x64xbf16>
    %cst_55 = arith.constant dense<0.000000e+00> : vector<2x256xf32>
    %189 = tpu.matmul %188, %27, %cst_55 {dimension_numbers = #tpu.dot_dimension_numbers<[1], [0], [0], [1], [0, 0, 1, 1], [], []>} : vector<2x64xbf16>, vector<64x256xbf16>, vector<2x256xf32> -> vector<2x256xf32>
    %190 = arith.addf %187, %189 : vector<2x256xf32>
    %191 = vector.extract_strided_slice %190 {offsets = [0, 0], sizes = [2, 64], strides = [1, 1]} : vector<2x256xf32> to vector<2x64xf32>
    %192 = arith.negf %191 : vector<2x64xf32>
    %193 = math.exp %192 : vector<2x64xf32>
    %cst_56 = arith.constant 1.000000e+00 : f32
    %194 = vector.broadcast %cst_56 : f32 to vector<2x64xf32>
    %195 = arith.addf %194, %193 : vector<2x64xf32>
    %196 = arith.divf %194, %195 : vector<2x64xf32>
    %197 = vector.extract_strided_slice %190 {offsets = [0, 64], sizes = [2, 64], strides = [1, 1]} : vector<2x256xf32> to vector<2x64xf32>
    %198 = arith.negf %197 : vector<2x64xf32>
    %199 = math.exp %198 : vector<2x64xf32>
    %cst_57 = arith.constant 1.000000e+00 : f32
    %200 = vector.broadcast %cst_57 : f32 to vector<2x64xf32>
    %201 = arith.addf %200, %199 : vector<2x64xf32>
    %202 = arith.divf %200, %201 : vector<2x64xf32>
    %203 = vector.extract_strided_slice %190 {offsets = [0, 128], sizes = [2, 64], strides = [1, 1]} : vector<2x256xf32> to vector<2x64xf32>
    %204 = math.tanh %203 : vector<2x64xf32>
    %205 = vector.extract_strided_slice %190 {offsets = [0, 192], sizes = [2, 64], strides = [1, 1]} : vector<2x256xf32> to vector<2x64xf32>
    %206 = arith.negf %205 : vector<2x64xf32>
    %207 = math.exp %206 : vector<2x64xf32>
    %cst_58 = arith.constant 1.000000e+00 : f32
    %208 = vector.broadcast %cst_58 : f32 to vector<2x64xf32>
    %209 = arith.addf %208, %207 : vector<2x64xf32>
    %210 = arith.divf %208, %209 : vector<2x64xf32>
    %211 = arith.mulf %202, %182 : vector<2x64xf32>
    %212 = arith.mulf %196, %204 : vector<2x64xf32>
    %213 = arith.addf %211, %212 : vector<2x64xf32>
    %214 = math.tanh %213 : vector<2x64xf32>
    %215 = arith.mulf %210, %214 : vector<2x64xf32>
    %c6_i32 = arith.constant 6 : i32
    %c2_i32_59 = arith.constant 2 : i32
    %216 = arith.muli %c6_i32, %c2_i32_59 : i32
    %217 = arith.index_cast %216 : i32 to index
    %c0_60 = arith.constant 0 : index
    %218 = vector.load %arg8[%217, %c0_60] : memref<16x256xf32, #tpu.memory_space<vmem>>, vector<2x256xf32>
    %219 = arith.truncf %215 : vector<2x64xf32> to vector<2x64xbf16>
    %cst_61 = arith.constant dense<0.000000e+00> : vector<2x256xf32>
    %220 = tpu.matmul %219, %27, %cst_61 {dimension_numbers = #tpu.dot_dimension_numbers<[1], [0], [0], [1], [0, 0, 1, 1], [], []>} : vector<2x64xbf16>, vector<64x256xbf16>, vector<2x256xf32> -> vector<2x256xf32>
    %221 = arith.addf %218, %220 : vector<2x256xf32>
    %222 = vector.extract_strided_slice %221 {offsets = [0, 0], sizes = [2, 64], strides = [1, 1]} : vector<2x256xf32> to vector<2x64xf32>
    %223 = arith.negf %222 : vector<2x64xf32>
    %224 = math.exp %223 : vector<2x64xf32>
    %cst_62 = arith.constant 1.000000e+00 : f32
    %225 = vector.broadcast %cst_62 : f32 to vector<2x64xf32>
    %226 = arith.addf %225, %224 : vector<2x64xf32>
    %227 = arith.divf %225, %226 : vector<2x64xf32>
    %228 = vector.extract_strided_slice %221 {offsets = [0, 64], sizes = [2, 64], strides = [1, 1]} : vector<2x256xf32> to vector<2x64xf32>
    %229 = arith.negf %228 : vector<2x64xf32>
    %230 = math.exp %229 : vector<2x64xf32>
    %cst_63 = arith.constant 1.000000e+00 : f32
    %231 = vector.broadcast %cst_63 : f32 to vector<2x64xf32>
    %232 = arith.addf %231, %230 : vector<2x64xf32>
    %233 = arith.divf %231, %232 : vector<2x64xf32>
    %234 = vector.extract_strided_slice %221 {offsets = [0, 128], sizes = [2, 64], strides = [1, 1]} : vector<2x256xf32> to vector<2x64xf32>
    %235 = math.tanh %234 : vector<2x64xf32>
    %236 = vector.extract_strided_slice %221 {offsets = [0, 192], sizes = [2, 64], strides = [1, 1]} : vector<2x256xf32> to vector<2x64xf32>
    %237 = arith.negf %236 : vector<2x64xf32>
    %238 = math.exp %237 : vector<2x64xf32>
    %cst_64 = arith.constant 1.000000e+00 : f32
    %239 = vector.broadcast %cst_64 : f32 to vector<2x64xf32>
    %240 = arith.addf %239, %238 : vector<2x64xf32>
    %241 = arith.divf %239, %240 : vector<2x64xf32>
    %242 = arith.mulf %233, %213 : vector<2x64xf32>
    %243 = arith.mulf %227, %235 : vector<2x64xf32>
    %244 = arith.addf %242, %243 : vector<2x64xf32>
    %245 = math.tanh %244 : vector<2x64xf32>
    %246 = arith.mulf %241, %245 : vector<2x64xf32>
    %c7_i32 = arith.constant 7 : i32
    %c2_i32_65 = arith.constant 2 : i32
    %247 = arith.muli %c7_i32, %c2_i32_65 : i32
    %248 = arith.index_cast %247 : i32 to index
    %c0_66 = arith.constant 0 : index
    %249 = vector.load %arg8[%248, %c0_66] : memref<16x256xf32, #tpu.memory_space<vmem>>, vector<2x256xf32>
    %250 = arith.truncf %246 : vector<2x64xf32> to vector<2x64xbf16>
    %cst_67 = arith.constant dense<0.000000e+00> : vector<2x256xf32>
    %251 = tpu.matmul %250, %27, %cst_67 {dimension_numbers = #tpu.dot_dimension_numbers<[1], [0], [0], [1], [0, 0, 1, 1], [], []>} : vector<2x64xbf16>, vector<64x256xbf16>, vector<2x256xf32> -> vector<2x256xf32>
    %252 = arith.addf %249, %251 : vector<2x256xf32>
    %253 = vector.extract_strided_slice %252 {offsets = [0, 0], sizes = [2, 64], strides = [1, 1]} : vector<2x256xf32> to vector<2x64xf32>
    %254 = arith.negf %253 : vector<2x64xf32>
    %255 = math.exp %254 : vector<2x64xf32>
    %cst_68 = arith.constant 1.000000e+00 : f32
    %256 = vector.broadcast %cst_68 : f32 to vector<2x64xf32>
    %257 = arith.addf %256, %255 : vector<2x64xf32>
    %258 = arith.divf %256, %257 : vector<2x64xf32>
    %259 = vector.extract_strided_slice %252 {offsets = [0, 64], sizes = [2, 64], strides = [1, 1]} : vector<2x256xf32> to vector<2x64xf32>
    %260 = arith.negf %259 : vector<2x64xf32>
    %261 = math.exp %260 : vector<2x64xf32>
    %cst_69 = arith.constant 1.000000e+00 : f32
    %262 = vector.broadcast %cst_69 : f32 to vector<2x64xf32>
    %263 = arith.addf %262, %261 : vector<2x64xf32>
    %264 = arith.divf %262, %263 : vector<2x64xf32>
    %265 = vector.extract_strided_slice %252 {offsets = [0, 128], sizes = [2, 64], strides = [1, 1]} : vector<2x256xf32> to vector<2x64xf32>
    %266 = math.tanh %265 : vector<2x64xf32>
    %267 = vector.extract_strided_slice %252 {offsets = [0, 192], sizes = [2, 64], strides = [1, 1]} : vector<2x256xf32> to vector<2x64xf32>
    %268 = arith.negf %267 : vector<2x64xf32>
    %269 = math.exp %268 : vector<2x64xf32>
    %cst_70 = arith.constant 1.000000e+00 : f32
    %270 = vector.broadcast %cst_70 : f32 to vector<2x64xf32>
    %271 = arith.addf %270, %269 : vector<2x64xf32>
    %272 = arith.divf %270, %271 : vector<2x64xf32>
    %273 = arith.mulf %264, %244 : vector<2x64xf32>
    %274 = arith.mulf %258, %266 : vector<2x64xf32>
    %275 = arith.addf %273, %274 : vector<2x64xf32>
    %276 = math.tanh %275 : vector<2x64xf32>
    %277 = arith.mulf %272, %276 : vector<2x64xf32>
    %c8_i32 = arith.constant 8 : i32
    %c0_71 = arith.constant 0 : index
    %c0_72 = arith.constant 0 : index
    %278 = vector.load %arg5[%c0_71, %c0_72] : memref<64x128xf32, #tpu.memory_space<vmem>>, vector<64x128xf32>
    %cst_73 = arith.constant dense<0.000000e+00> : vector<2x128xf32>
    %279 = tpu.matmul %277, %278, %cst_73 {dimension_numbers = #tpu.dot_dimension_numbers<[1], [0], [0], [1], [0, 0, 1, 1], [], []>} : vector<2x64xf32>, vector<64x128xf32>, vector<2x128xf32> -> vector<2x128xf32>
    %c0_74 = arith.constant 0 : index
    %c0_75 = arith.constant 0 : index
    %280 = vector.load %arg6[%c0_74, %c0_75] : memref<1x128xf32, #tpu.memory_space<vmem>>, vector<1x128xf32>
    %281 = vector.broadcast %280 : vector<1x128xf32> to vector<2x128xf32>
    %282 = arith.addf %279, %281 : vector<2x128xf32>
    %c0_76 = arith.constant 0 : index
    %c0_77 = arith.constant 0 : index
    %283 = vector.load %arg7[%c0_76, %c0_77] : memref<2x128xf32, #tpu.memory_space<vmem>>, vector<2x128xf32>
    tpu.vector_store %arg7[%c0_76, %c0_77], %282 {strides = array<i32>} : memref<2x128xf32, #tpu.memory_space<vmem>>, vector<2x128xf32>,
    return
  }
  func.func @transform_0(%arg0: i32) -> (i32, i32) {
    %c0_i32 = arith.constant 0 : i32
    %c0_i32_0 = arith.constant 0 : i32
    %c0_i32_1 = arith.constant 0 : i32
    return %c0_i32, %c0_i32_0 : i32, i32
  }
  func.func @transform_1(%arg0: i32) -> (i32, i32, i32) {
    %c0_i32 = arith.constant 0 : i32
    %c0_i32_0 = arith.constant 0 : i32
    %c0_i32_1 = arith.constant 0 : i32
    %c0_i32_2 = arith.constant 0 : i32
    return %c0_i32, %c0_i32_0, %c0_i32_1 : i32, i32, i32
  }
  func.func @transform_2(%arg0: i32) -> (i32, i32) {
    %c0_i32 = arith.constant 0 : i32
    %c0_i32_0 = arith.constant 0 : i32
    %c0_i32_1 = arith.constant 0 : i32
    return %c0_i32, %c0_i32_0 : i32, i32
  }
  func.func @transform_3(%arg0: i32) -> (i32, i32) {
    %c0_i32 = arith.constant 0 : i32
    %c0_i32_0 = arith.constant 0 : i32
    %c0_i32_1 = arith.constant 0 : i32
    return %c0_i32, %c0_i32_0 : i32, i32
  }
  func.func @transform_4(%arg0: i32) -> (i32, i32) {
    %c0_i32 = arith.constant 0 : i32
    %c0_i32_0 = arith.constant 0 : i32
    %c0_i32_1 = arith.constant 0 : i32
    return %c0_i32, %c0_i32_0 : i32, i32
  }
  func.func @transform_5(%arg0: i32) -> (i32, i32) {
    %c0_i32 = arith.constant 0 : i32
    %c0_i32_0 = arith.constant 0 : i32
    %c0_i32_1 = arith.constant 0 : i32
    return %c0_i32, %c0_i32_0 : i32, i32
  }
  func.func @transform_6(%arg0: i32) -> (i32, i32) {
    %c0_i32 = arith.constant 0 : i32
    %c0_i32_0 = arith.constant 0 : i32
    %c0_i32_1 = arith.constant 0 : i32
    return %c0_i32, %c0_i32_0 : i32, i32
  }
}

</mosaic_0001>

<bundles_post_ra>
// kernel: tpu_custom_call.1
= control target key start
LH: loop header
LB: loop body
LE: loop exit
PB: predicated region body
PF: predicated region fallthrough
CT: control target
= control target key end

     0   :  { %11 = vsyncpa [#allocation4], 0  ;;  %s4521_s0 = inlined_call_operand.hbm [shape: bf16[16,768], index: 0, kind: input, shape index: {}]   ;;  %s4522_s1 = inlined_call_operand.hbm [shape: bf16[3,768,256], index: 1, kind: input, shape index: {}]   ;;  %s4523_s2 = inlined_call_operand.hbm [shape: f32[1,256], index: 2, kind: input, shape index: {}]   ;;  %s4524_s3 = inlined_call_operand.hbm [shape: bf16[64,256], index: 3, kind: input, shape index: {}]   ;;  %s4525_s4 = inlined_call_operand.hbm [shape: f32[64,128], index: 4, kind: input, shape index: {}]   ;;  %s4526_s5 = inlined_call_operand.hbm [shape: f32[1,128], index: 5, kind: input, shape index: {}]   ;;  %s4527_s6 = inlined_call_operand.hbm [shape: f32[2,128], index: 6, kind: output, shape index: {}]  }
   0x1   :  { %12 = vsyncpa [#allocation7], 0 }
   0x2   :  { %13 = vsyncpa [#allocation10], 0 }
   0x3   :  { %14 = vsyncpa [#allocation13], 0 }
   0x4   :  { %15 = vsyncpa [#allocation5], 0  ;;  %s4249_s21 = smov [#allocation6]   ;;  %s4085_s25 = scalar_lea.hbm %s4522_s1, 36864 }
   0x5   :  { %s33_s22 = sshll.u32 %s4249_s21, 4  ;;  %p4086_p0 = scmp.ne.s32.totalorder %s4522_s1, %s4085_s25  ;;  %s34_s22 = int_to_ptr.vmem [resolvable:$true] %s33_s22 }
   0x6   :  { %p4089_p1 = scmp.lt.u32.totalorder %s4085_s25, %s4522_s1 }
   0x8   :  { %p4091_p2 = pnand %p4089_p1, %p4086_p0 }
   0xa   :  { %4094 = shalt.err (!%p4091_p2)
}
   0xb   :  { %s4095_s30 = scalar_lea.vmem %s34_s22, 36864  ;;  %p4100_p4 = scmp.lt.s32.totalorder %s34_s22, %s34_s22 }
   0xc   :  { %p4096_p3 = scmp.ne.s32.totalorder %s34_s22, %s4095_s30  ;;  %p4101_p5 = scmp.lt.s32.totalorder %s4095_s30, %s4095_s30 }
   0xe   :  { %p4102_p6 = por %p4101_p5, %p4100_p4 }
  0x10   :  { %p4103_p7 = pnand %p4102_p6, %p4096_p3 }
  0x12   :  { %4106 = shalt.err (!%p4103_p7)
}
  0x13   :  { %s4250_s7 = smov 128   ;;  %s4251_s8 = smov 8  }
  0x14   :  { %39 = dma.hbm_to_vmem [thread:$0]  %s4522_s1, 36864, %s34_s22, [#allocation7], %s4250_s7, %s4250_s7, %s4251_s8  }
  0x15   :  { %s4252_s11 = smov [#allocation9]   ;;  %s4253_s13 = smov [#allocation3]  }
  0x16   :  { %s55_s12 = sshll.u32 %s4252_s11, 4  ;;  %s21_s14 = sshll.u32 %s4253_s13, 4  ;;  %s56_s12 = int_to_ptr.vmem [resolvable:$true] %s55_s12  ;;  %s22_s14 = int_to_ptr.vmem [resolvable:$true] %s21_s14 }
  0x17   :  { %s4107_s17 = scalar_lea.hbm %s4524_s3, 1024 }
  0x18   :  { %p4108_p8 = scmp.ne.s32.totalorder %s4524_s3, %s4107_s17  ;;  %p4111_p9 = scmp.lt.u32.totalorder %s4107_s17, %s4524_s3 }
  0x1a   :  { %p4113_p10 = pnand %p4111_p9, %p4108_p8 }
  0x1c   :  { %4116 = shalt.err (!%p4113_p10)
}
  0x1d   :  { %s4117_s1 = scalar_lea.vmem %s56_s12, 1024  ;;  %p4122_p12 = scmp.lt.s32.totalorder %s56_s12, %s56_s12 }
  0x1e   :  { %p4118_p11 = scmp.ne.s32.totalorder %s56_s12, %s4117_s1  ;;  %p4123_p13 = scmp.lt.s32.totalorder %s4117_s1, %s4117_s1 }
  0x20   :  { %p4124_p0 = por %p4123_p13, %p4122_p12 }
  0x22   :  { %p4125_p1 = pnand %p4124_p0, %p4118_p11 }
  0x24   :  { %4128 = shalt.err (!%p4125_p1)
}
  0x25   :  { %61 = dma.hbm_to_vmem [thread:$0]  %s4524_s3, 1024, %s56_s12, [#allocation10], %s4250_s7, %s4250_s7, %s4251_s8  }
  0x26   :  { %s4129_s26 = scalar_lea.hbm %s4521_s0, 768 }
  0x27   :  { %p4130_p2 = scmp.ne.s32.totalorder %s4521_s0, %s4129_s26  ;;  %p4133_p3 = scmp.lt.u32.totalorder %s4129_s26, %s4521_s0 }
  0x29   :  { %p4135_p4 = pnand %p4133_p3, %p4130_p2 }
  0x2b   :  { %4138 = shalt.err (!%p4135_p4)
}
  0x2c   :  { %s4139_s9 = scalar_lea.vmem %s22_s14, 768  ;;  %p4144_p6 = scmp.lt.s32.totalorder %s22_s14, %s22_s14 }
  0x2d   :  { %p4140_p5 = scmp.ne.s32.totalorder %s22_s14, %s4139_s9  ;;  %p4145_p7 = scmp.lt.s32.totalorder %s4139_s9, %s4139_s9 }
  0x2f   :  { %p4146_p8 = por %p4145_p7, %p4144_p6 }
  0x31   :  { %p4147_p9 = pnand %p4146_p8, %p4140_p5 }
  0x33   :  { %4150 = shalt.err (!%p4147_p9)
}
  0x34   :  { %s4254_s3 = smov 384   ;;  %s4255_s10 = smov 24  }
  0x35   :  { %27 = dma.hbm_to_vmem [thread:$0]  %s4521_s0, 768, %s22_s14, [#allocation4], %s4254_s3, %s4254_s3, %s4255_s10  }
  0x36   :  { %s4256_s13 = smov [#allocation8]   ;;  %s4257_s16 = smov [#allocation11]  }
  0x37   :  { %s46_s15 = sshll.u32 %s4256_s13, 4  ;;  %s67_s17 = sshll.u32 %s4257_s16, 4  ;;  %s47_s15 = int_to_ptr.vmem [resolvable:$true] %s46_s15  ;;  %s68_s17 = int_to_ptr.vmem [resolvable:$true] %s67_s17 }
  0x38   :  { %s4151_s20 = scalar_lea.hbm %s4523_s2, 32 }
  0x39   :  { %p4152_p10 = scmp.ne.s32.totalorder %s4523_s2, %s4151_s20  ;;  %p4155_p11 = scmp.lt.u32.totalorder %s4151_s20, %s4523_s2 }
  0x3b   :  { %p4157_p12 = pnand %p4155_p11, %p4152_p10 }
  0x3d   :  { %4160 = shalt.err (!%p4157_p12)
}
  0x3e   :  { %s4161_s0 = scalar_lea.vmem %s47_s15, 32  ;;  %p4166_p0 = scmp.lt.s32.totalorder %s47_s15, %s47_s15 }
  0x3f   :  { %p4162_p13 = scmp.ne.s32.totalorder %s47_s15, %s4161_s0  ;;  %p4167_p1 = scmp.lt.s32.totalorder %s4161_s0, %s4161_s0 }
  0x41   :  { %p4168_p2 = por %p4167_p1, %p4166_p0 }
  0x43   :  { %p4169_p3 = pnand %p4168_p2, %p4162_p13 }
  0x45   :  { %4172 = shalt.err (!%p4169_p3)
}
  0x46   :  { %49 = dma.hbm_to_vmem [thread:$0]  %s4523_s2, 32, %s47_s15, [#allocation7]  }
  0x47   :  { %s4173_s27 = scalar_lea.hbm %s4525_s4, 1024 }
  0x48   :  { %p4174_p4 = scmp.ne.s32.totalorder %s4525_s4, %s4173_s27  ;;  %p4177_p5 = scmp.lt.u32.totalorder %s4173_s27, %s4525_s4 }
  0x4a   :  { %p4179_p6 = pnand %p4177_p5, %p4174_p4 }
  0x4c   :  { %4182 = shalt.err (!%p4179_p6)
}
  0x4d   :  { %s4183_s3 = scalar_lea.vmem %s68_s17, 1024  ;;  %p4188_p8 = scmp.lt.s32.totalorder %s68_s17, %s68_s17 }
  0x4e   :  { %p4184_p7 = scmp.ne.s32.totalorder %s68_s17, %s4183_s3  ;;  %p4189_p9 = scmp.lt.s32.totalorder %s4183_s3, %s4183_s3 }
  0x50   :  { %p4190_p10 = por %p4189_p9, %p4188_p8 }
  0x52   :  { %p4191_p11 = pnand %p4190_p10, %p4184_p7 }
  0x54   :  { %4194 = shalt.err (!%p4191_p11)
}
  0x55   :  { %73 = dma.hbm_to_vmem [thread:$0]  %s4525_s4, 1024, %s68_s17, [#allocation10], %s4250_s7, %s4250_s7, %s4251_s8  }
  0x56   :  { %s4258_s11 = smov [#allocation12]   ;;  %s4195_s16 = scalar_lea.hbm %s4526_s5, 16 }
  0x57   :  { %s80_s12 = sshll.u32 %s4258_s11, 4  ;;  %p4196_p12 = scmp.ne.s32.totalorder %s4526_s5, %s4195_s16  ;;  %s81_s12 = int_to_ptr.vmem [resolvable:$true] %s80_s12 }
  0x58   :  { %p4199_p13 = scmp.lt.u32.totalorder %s4195_s16, %s4526_s5 }
  0x5a   :  { %p4201_p0 = pnand %p4199_p13, %p4196_p12 }
  0x5c   :  { %4204 = shalt.err (!%p4201_p0)
}
  0x5d   :  { %s4205_s1 = scalar_lea.vmem %s81_s12, 16  ;;  %s4209_s4 = scalar_lea.vmem %s81_s12, 32 }
  0x5e   :  { %p4206_p1 = scmp.ne.s32.totalorder %s81_s12, %s4205_s1  ;;  %p4210_p2 = scmp.lt.s32.totalorder %s81_s12, %s81_s12 }
  0x5f   :  { %p4211_p3 = scmp.lt.s32.totalorder %s4209_s4, %s4205_s1 }
  0x61   :  { %p4212_p4 = por %p4211_p3, %p4210_p2 }
  0x63   :  { %p4213_p5 = pnand %p4212_p4, %p4206_p1 }
  0x65   :  { %4216 = shalt.err (!%p4213_p5)
}
  0x66   :  { %83 = dma.hbm_to_vmem [thread:$0]  %s4526_s5, 16, %s81_s12, [#allocation13]  }
  0x67   :  { %4239 = dma.done.wait [#allocation4], 768  }
  0x68   :  { %4240 = vsyncadd [#allocation4], 4294966528 }
  0x69   :  { %4241 = dma.done.wait [#allocation7], 36896  }
  0x6a   :  { %4242 = vsyncadd [#allocation7], 4294930400 }
  0x6b   :  { %4243 = dma.done.wait [#allocation10], 2048  }
  0x6c   :  { %4244 = vsyncadd [#allocation10], 4294965248 }
  0x6d   :  { %4245 = dma.done.wait [#allocation13], 16  }
  0x6e   :  { %4246 = vsyncadd [#allocation13], 4294967280  ;;  %v3533_v0 = vld [vmem:[#allocation6 + $0x4] ss:$8 sps:$4 sm:$0xff]   ;;  %v3535_v1 = vld [vmem:[#allocation6] ss:$8 sps:$4 sm:$0xff]  }
  0x6f   :  { %715 = vmatprep.subr.bf16.mxu0 %v3533_v0  ;;  %v3536_v2 = vld [vmem:[#allocation6 + $0x14] ss:$8 sps:$4 sm:$0xff]   ;;  %v3538_v3 = vld [vmem:[#allocation6 + $0x10] ss:$8 sps:$4 sm:$0xff]   ;;  %v3539_v4 = vld [vmem:[#allocation6 + $0x24] ss:$8 sps:$4 sm:$0xff]  }
  0x70   :  { %716 = vmatpush1.bf16.msra.mxu0 %v3535_v1  ;;  %v3541_v5 = vld [vmem:[#allocation6 + $0x20] ss:$8 sps:$4 sm:$0xff]   ;;  %v3542_v6 = vld [vmem:[#allocation6 + $0x34] ss:$8 sps:$4 sm:$0xff]   ;;  %v3544_v7 = vld [vmem:[#allocation6 + $0x30] ss:$8 sps:$4 sm:$0xff]  }
  0x71   :  { %717 = vmatprep.subr.bf16.mxu0 %v3536_v2  ;;  %v3545_v8 = vld [vmem:[#allocation6 + $0x44] ss:$8 sps:$4 sm:$0xff]   ;;  %v3547_v9 = vld [vmem:[#allocation6 + $0x40] ss:$8 sps:$4 sm:$0xff]   ;;  %v3548_v10 = vld [vmem:[#allocation6 + $0x54] ss:$8 sps:$4 sm:$0xff]  }
  0x72   :  { %v3550_v11 = vld [vmem:[#allocation6 + $0x50] ss:$8 sps:$4 sm:$0xff]   ;;  %v3551_v12 = vld [vmem:[#allocation6 + $0x64] ss:$8 sps:$4 sm:$0xff]   ;;  %v3553_v14 = vld [vmem:[#allocation6 + $0x60] ss:$8 sps:$4 sm:$0xff]  }
  0x73   :  { %v3578_v13 = vld [vmem:[#allocation6 + $0x604] ss:$8 sps:$4 sm:$0xff]   ;;  %v3554_v15 = vld [vmem:[#allocation6 + $0x74] ss:$8 sps:$4 sm:$0xff]   ;;  %v3582_v16 = vld [vmem:[#allocation6 + $0x600] ss:$8 sps:$4 sm:$0xff]  }
  0x74   :  { %718 = vmatpush1.bf16.msra.mxu0 %v3538_v3  ;;  %1518 = vmatprep.subr.bf16.mxu1 %v3578_v13  ;;  %v3584_v17 = vld [vmem:[#allocation6 + $0x614] ss:$8 sps:$4 sm:$0xff]   ;;  %v3556_v19 = vld [vmem:[#allocation6 + $0x70] ss:$8 sps:$4 sm:$0xff]   ;;  %v3593_v21 = vld [vmem:[#allocation6 + $0x624] ss:$8 sps:$4 sm:$0xff]  }
  0x75   :  { %719 = vmatprep.subr.bf16.mxu0 %v3539_v4  ;;  %1519 = vmatpush1.bf16.msra.mxu1 %v3582_v16  ;;  %v3586_v18 = vld [vmem:[#allocation3 + $0x4] ss:$24 sps:$4 sm:$0xff]   ;;  %v3591_v20 = vld [vmem:[#allocation6 + $0x610] ss:$8 sps:$4 sm:$0xff]   ;;  %v3598_v23 = vld [vmem:[#allocation6 + $0x620] ss:$8 sps:$4 sm:$0xff]  }
  0x76   :  { %1520 = vmatprep.subr.bf16.mxu1 %v3584_v17  ;;  %747 = vmatprep.mubr.bf16.mxu0 %v3586_v18  ;;  %v3557_v22 = vld [vmem:[#allocation6 + $0x84] ss:$8 sps:$4 sm:$0xff]   ;;  %v3599_v24 = vld [vmem:[#allocation6 + $0x634] ss:$8 sps:$4 sm:$0xff]   ;;  %v3559_v25 = vld [vmem:[#allocation6 + $0x80] ss:$8 sps:$4 sm:$0xff]  }
  0x77   :  { %1550 = vmatprep.mubr.bf16.mxu1 %v3586_v18  ;;  %v3560_v26 = vld [vmem:[#allocation6 + $0x94] ss:$8 sps:$4 sm:$0xff]   ;;  %v3604_v27 = vld [vmem:[#allocation6 + $0x630] ss:$8 sps:$4 sm:$0xff]   ;;  %v3605_v28 = vld [vmem:[#allocation6 + $0x644] ss:$8 sps:$4 sm:$0xff]  }
  0x78   :  { %720 = vmatpush1.bf16.msra.mxu0 %v3541_v5  ;;  %v3562_v29 = vld [vmem:[#allocation6 + $0x90] ss:$8 sps:$4 sm:$0xff]   ;;  %v3563_v30 = vld [vmem:[#allocation6 + $0xa4] ss:$8 sps:$4 sm:$0xff]   ;;  %v3610_v31 = vld [vmem:[#allocation6 + $0x640] ss:$8 sps:$4 sm:$0xff]  }
  0x79   :  { %721 = vmatprep.subr.bf16.mxu0 %v3542_v6  ;;  %1521 = vmatpush1.bf16.msra.mxu1 %v3591_v20  ;;  %v3611_v32 = vld [vmem:[#allocation6 + $0x654] ss:$8 sps:$4 sm:$0xff]   ;;  %v3565_v33 = vld [vmem:[#allocation6 + $0xa0] ss:$8 sps:$4 sm:$0xff]   ;;  %v3616_v35 = vld [vmem:[#allocation6 + $0x650] ss:$8 sps:$4 sm:$0xff]  }
  0x7a   :  { %1522 = vmatprep.subr.bf16.mxu1 %v3593_v21  ;;  %v3566_v34 = vld [vmem:[#allocation6 + $0xb4] ss:$8 sps:$4 sm:$0xff]   ;;  %v3617_v36 = vld [vmem:[#allocation6 + $0x664] ss:$8 sps:$4 sm:$0xff]   ;;  %v3568_v37 = vld [vmem:[#allocation6 + $0xb0] ss:$8 sps:$4 sm:$0xff]  }
  0x7b   :  { %v3569_v38 = vld [vmem:[#allocation6 + $0xc4] ss:$8 sps:$4 sm:$0xff]   ;;  %v3622_v39 = vld [vmem:[#allocation6 + $0x660] ss:$8 sps:$4 sm:$0xff]   ;;  %v3623_v40 = vld [vmem:[#allocation6 + $0x674] ss:$8 sps:$4 sm:$0xff]  }
  0x7c   :  { %722 = vmatpush1.bf16.msra.mxu0 %v3544_v7  ;;  %v3571_v41 = vld [vmem:[#allocation6 + $0xc0] ss:$8 sps:$4 sm:$0xff]   ;;  %v3572_v42 = vld [vmem:[#allocation6 + $0xd4] ss:$8 sps:$4 sm:$0xff]   ;;  %v3628_v43 = vld [vmem:[#allocation6 + $0x670] ss:$8 sps:$4 sm:$0xff]  }
  0x7d   :  { %723 = vmatprep.subr.bf16.mxu0 %v3545_v8  ;;  %1523 = vmatpush1.bf16.msra.mxu1 %v3598_v23  ;;  %v3629_v44 = vld [vmem:[#allocation6 + $0x684] ss:$8 sps:$4 sm:$0xff]   ;;  %v3574_v45 = vld [vmem:[#allocation6 + $0xd0] ss:$8 sps:$4 sm:$0xff]   ;;  %v3634_v47 = vld [vmem:[#allocation6 + $0x680] ss:$8 sps:$4 sm:$0xff]  }
  0x7e   :  { %1524 = vmatprep.subr.bf16.mxu1 %v3599_v24  ;;  %v3575_v46 = vld [vmem:[#allocation6 + $0xe4] ss:$8 sps:$4 sm:$0xff]   ;;  %v3635_v48 = vld [vmem:[#allocation6 + $0x694] ss:$8 sps:$4 sm:$0xff]   ;;  %v3577_v49 = vld [vmem:[#allocation6 + $0xe0] ss:$8 sps:$4 sm:$0xff]  }
  0x7f   :  { %v3580_v50 = vld [vmem:[#allocation6 + $0xf4] ss:$8 sps:$4 sm:$0xff]   ;;  %v3640_v51 = vld [vmem:[#allocation6 + $0x690] ss:$8 sps:$4 sm:$0xff]   ;;  %v3641_v52 = vld [vmem:[#allocation6 + $0x6a4] ss:$8 sps:$4 sm:$0xff]  }
  0x80   :  { %724 = vmatpush1.bf16.msra.mxu0 %v3547_v9  ;;  %v3583_v53 = vld [vmem:[#allocation6 + $0xf0] ss:$8 sps:$4 sm:$0xff]   ;;  %v3590_v54 = vld [vmem:[#allocation6 + $0x104] ss:$8 sps:$4 sm:$0xff]   ;;  %v3646_v55 = vld [vmem:[#allocation6 + $0x6a0] ss:$8 sps:$4 sm:$0xff]  }
  0x81   :  { %725 = vmatprep.subr.bf16.mxu0 %v3548_v10  ;;  %1525 = vmatpush1.bf16.msra.mxu1 %v3604_v27  ;;  %v3647_v56 = vld [vmem:[#allocation6 + $0x6b4] ss:$8 sps:$4 sm:$0xff]   ;;  %v3592_v57 = vld [vmem:[#allocation3] ss:$24 sps:$4 sm:$0xff]   ;;  %v3653_v61 = vld [vmem:[#allocation6 + $0x6c4] ss:$8 sps:$4 sm:$0xff]  }
  0x82   :  { %1526 = vmatprep.subr.bf16.mxu1 %v3605_v28  ;;  %v3588_v58 = vld [vmem:[#allocation6 + $0x100] ss:$8 sps:$4 sm:$0xff]   ;;  %v3597_v59 = vld [vmem:[#allocation6 + $0x114] ss:$8 sps:$4 sm:$0xff]   ;;  %v3652_v60 = vld [vmem:[#allocation6 + $0x6b0] ss:$8 sps:$4 sm:$0xff]  }
  0x83   :  { %v3595_v62 = vld [vmem:[#allocation6 + $0x110] ss:$8 sps:$4 sm:$0xff]   ;;  %v3603_v63 = vld [vmem:[#allocation6 + $0x124] ss:$8 sps:$4 sm:$0xff]   ;;  %v3658_v0 = vld [vmem:[#allocation6 + $0x6c0] ss:$8 sps:$4 sm:$0xff]  }
  0x84   :  { %726 = vmatpush1.bf16.msra.mxu0 %v3550_v11  ;;  %v3659_v1 = vld [vmem:[#allocation6 + $0x6d4] ss:$8 sps:$4 sm:$0xff]   ;;  %v3601_v3 = vld [vmem:[#allocation6 + $0x120] ss:$8 sps:$4 sm:$0xff]   ;;  %v3664_v5 = vld [vmem:[#allocation6 + $0x6d0] ss:$8 sps:$4 sm:$0xff]  }
  0x85   :  { %727 = vmatprep.subr.bf16.mxu0 %v3551_v12  ;;  %1527 = vmatpush1.bf16.msra.mxu1 %v3610_v31  ;;  %v3688_v2 = vld [vmem:[#allocation3 + $0xc] ss:$24 sps:$4 sm:$0xff]   ;;  %v3665_v6 = vld [vmem:[#allocation6 + $0x6e4] ss:$8 sps:$4 sm:$0xff]   ;;  %v3607_v7 = vld [vmem:[#allocation6 + $0x130] ss:$8 sps:$4 sm:$0xff]  }
  0x86   :  { %1528 = vmatprep.subr.bf16.mxu1 %v3611_v32  ;;  %v3609_v4 = vld [vmem:[#allocation6 + $0x134] ss:$8 sps:$4 sm:$0xff]   ;;  %v3615_v8 = vld [vmem:[#allocation6 + $0x144] ss:$8 sps:$4 sm:$0xff]   ;;  %v3670_v9 = vld [vmem:[#allocation6 + $0x6e0] ss:$8 sps:$4 sm:$0xff]  }
  0x87   :  { %v3671_v10 = vld [vmem:[#allocation6 + $0x6f4] ss:$8 sps:$4 sm:$0xff]   ;;  %v3613_v11 = vld [vmem:[#allocation6 + $0x140] ss:$8 sps:$4 sm:$0xff]   ;;  %v3676_v13 = vld [vmem:[#allocation6 + $0x6f0] ss:$8 sps:$4 sm:$0xff]  }
  0x88   :  { %728 = vmatpush1.bf16.msra.mxu0 %v3553_v14  ;;  %v3621_v12 = vld [vmem:[#allocation6 + $0x154] ss:$8 sps:$4 sm:$0xff]   ;;  %v3679_v14 = vld [vmem:[#allocation6 + $0x704] ss:$8 sps:$4 sm:$0xff]   ;;  %v3677_v17 = vld [vmem:[#allocation6 + $0x700] ss:$8 sps:$4 sm:$0xff]  }
  0x89   :  { %729 = vmatprep.subr.bf16.mxu0 %v3554_v15  ;;  %1529 = vmatpush1.bf16.msra.mxu1 %v3616_v35  ;;  %v3619_v15 = vld [vmem:[#allocation6 + $0x150] ss:$8 sps:$4 sm:$0xff]   ;;  %v3627_v16 = vld [vmem:[#allocation6 + $0x164] ss:$8 sps:$4 sm:$0xff]   ;;  %v3685_v18 = vld [vmem:[#allocation6 + $0x714] ss:$8 sps:$4 sm:$0xff]  }
  0x8a   :  { %1530 = vmatprep.subr.bf16.mxu1 %v3617_v36  ;;  %v3633_v20 = vld [vmem:[#allocation6 + $0x174] ss:$8 sps:$4 sm:$0xff]   ;;  %v3683_v21 = vld [vmem:[#allocation6 + $0x710] ss:$8 sps:$4 sm:$0xff]   ;;  %v3639_v24 = vld [vmem:[#allocation6 + $0x184] ss:$8 sps:$4 sm:$0xff]  }
  0x8b   :  { %v3631_v23 = vld [vmem:[#allocation6 + $0x170] ss:$8 sps:$4 sm:$0xff]   ;;  %v3637_v27 = vld [vmem:[#allocation6 + $0x180] ss:$8 sps:$4 sm:$0xff]   ;;  %v3645_v28 = vld [vmem:[#allocation6 + $0x194] ss:$8 sps:$4 sm:$0xff]  }
  0x8c   :  { %730 = vmatpush1.bf16.msra.mxu0 %v3556_v19  ;;  %v3625_v19 = vld [vmem:[#allocation6 + $0x160] ss:$8 sps:$4 sm:$0xff]   ;;  %v3643_v31 = vld [vmem:[#allocation6 + $0x190] ss:$8 sps:$4 sm:$0xff]   ;;  %v3651_v32 = vld [vmem:[#allocation6 + $0x1a4] ss:$8 sps:$4 sm:$0xff]  }
  0x8d   :  { %731 = vmatprep.subr.bf16.mxu0 %v3557_v22  ;;  %1531 = vmatpush1.bf16.msra.mxu1 %v3622_v39  ;;  %v3694_v22 = vld [vmem:[#allocation6 + $0x724] ss:$8 sps:$4 sm:$0xff]   ;;  %v3649_v35 = vld [vmem:[#allocation6 + $0x1a0] ss:$8 sps:$4 sm:$0xff]   ;;  %v3657_v36 = vld [vmem:[#allocation6 + $0x1b4] ss:$8 sps:$4 sm:$0xff]  }
  0x8e   :  { %1532 = vmatprep.subr.bf16.mxu1 %v3623_v40  ;;  %v3655_v39 = vld [vmem:[#allocation6 + $0x1b0] ss:$8 sps:$4 sm:$0xff]   ;;  %v3663_v40 = vld [vmem:[#allocation6 + $0x1c4] ss:$8 sps:$4 sm:$0xff]   ;;  %s4260_s5 = smov 64   ;;  %vm2363_vm4 = vcmask 523264  }
  0x8f   :  { %vm4262_vm5 = vmmov 0   ;;  %s4264_s17 = smov [#allocation14]  }
  0x90   :  { %732 = vmatpush1.bf16.msra.mxu0 %v3559_v25  ;;  %v3692_v25 = vld [vmem:[#allocation6 + $0x720] ss:$8 sps:$4 sm:$0xff]   ;;  %s3110_s22 = sshll.u32 %s4264_s17, 4  ;;  %s3111_s22 = int_to_ptr.vmem [resolvable:$true] %s3110_s22 }
  0x91   :  { %733 = vmatprep.subr.bf16.mxu0 %v3560_v26  ;;  %1533 = vmatpush1.bf16.msra.mxu1 %v3628_v43  ;;  %v3700_v26 = vld [vmem:[#allocation6 + $0x734] ss:$8 sps:$4 sm:$0xff]   ;;  %v3661_v43 = vld [vmem:[#allocation6 + $0x1c0] ss:$8 sps:$4 sm:$0xff]   ;;  %s4217_s23 = scalar_lea.vmem %s3111_s22, 32  ;;  %p4222_p7 = scmp.lt.s32.totalorder %s3111_s22, %s3111_s22 }
  0x92   :  { %1534 = vmatprep.subr.bf16.mxu1 %v3629_v44  ;;  %v3669_v44 = vld [vmem:[#allocation6 + $0x1d4] ss:$8 sps:$4 sm:$0xff]   ;;  %p4218_p6 = scmp.ne.s32.totalorder %s3111_s22, %s4217_s23  ;;  %p4223_p8 = scmp.lt.s32.totalorder %s4217_s23, %s4217_s23 }
  0x94   :  { %734 = vmatpush1.bf16.msra.mxu0 %v3562_v29  ;;  %v3698_v29 = vld [vmem:[#allocation6 + $0x730] ss:$8 sps:$4 sm:$0xff]   ;;  %p4224_p9 = por %p4223_p8, %p4222_p7 }
  0x95   :  { %735 = vmatprep.subr.bf16.mxu0 %v3563_v30  ;;  %1535 = vmatpush1.bf16.msra.mxu1 %v3634_v47  ;;  %v3706_v30 = vld [vmem:[#allocation6 + $0x744] ss:$8 sps:$4 sm:$0xff]   ;;  %v3667_v47 = vld [vmem:[#allocation6 + $0x1d0] ss:$8 sps:$4 sm:$0xff]  }
  0x96   :  { %1536 = vmatprep.subr.bf16.mxu1 %v3635_v48  ;;  %v3675_v48 = vld [vmem:[#allocation6 + $0x1e4] ss:$8 sps:$4 sm:$0xff]   ;;  %p4225_p10 = pnand %p4224_p9, %p4218_p6 }
  0x98   :  { %736 = vmatpush1.bf16.msra.mxu0 %v3565_v33  ;;  %v3704_v33 = vld [vmem:[#allocation6 + $0x740] ss:$8 sps:$4 sm:$0xff]  }
  0x99   :  { %737 = vmatprep.subr.bf16.mxu0 %v3566_v34  ;;  %1537 = vmatpush1.bf16.msra.mxu1 %v3640_v51  ;;  %v3712_v34 = vld [vmem:[#allocation6 + $0x754] ss:$8 sps:$4 sm:$0xff]   ;;  %v3673_v51 = vld [vmem:[#allocation6 + $0x1e0] ss:$8 sps:$4 sm:$0xff]  }
  0x9a   :  { %1538 = vmatprep.subr.bf16.mxu1 %v3641_v52  ;;  %v3682_v52 = vld [vmem:[#allocation6 + $0x1f4] ss:$8 sps:$4 sm:$0xff]  }
  0x9c   :  { %738 = vmatpush1.bf16.msra.mxu0 %v3568_v37  ;;  %v3710_v37 = vld [vmem:[#allocation6 + $0x750] ss:$8 sps:$4 sm:$0xff]  }
  0x9d   :  { %739 = vmatprep.subr.bf16.mxu0 %v3569_v38  ;;  %1539 = vmatpush1.bf16.msra.mxu1 %v3646_v55  ;;  %v3718_v38 = vld [vmem:[#allocation6 + $0x764] ss:$8 sps:$4 sm:$0xff]   ;;  %v3680_v55 = vld [vmem:[#allocation6 + $0x1f0] ss:$8 sps:$4 sm:$0xff]  }
  0x9e   :  { %1540 = vmatprep.subr.bf16.mxu1 %v3647_v56  ;;  %v3691_v56 = vld [vmem:[#allocation6 + $0x204] ss:$8 sps:$4 sm:$0xff]  }
  0xa0   :  { %740 = vmatpush1.bf16.msra.mxu0 %v3571_v41  ;;  %v3716_v41 = vld [vmem:[#allocation6 + $0x760] ss:$8 sps:$4 sm:$0xff]  }
  0xa1   :  { %741 = vmatprep.subr.bf16.mxu0 %v3572_v42  ;;  %1541 = vmatpush1.bf16.msra.mxu1 %v3652_v60  ;;  %v3724_v42 = vld [vmem:[#allocation6 + $0x774] ss:$8 sps:$4 sm:$0xff]   ;;  %v3689_v60 = vld [vmem:[#allocation6 + $0x200] ss:$8 sps:$4 sm:$0xff]  }
  0xa2   :  { %1542 = vmatprep.subr.bf16.mxu1 %v3653_v61  ;;  %v3697_v61 = vld [vmem:[#allocation6 + $0x214] ss:$8 sps:$4 sm:$0xff]  }
  0xa4   :  { %742 = vmatpush1.bf16.msra.mxu0 %v3574_v45  ;;  %v3722_v45 = vld [vmem:[#allocation6 + $0x770] ss:$8 sps:$4 sm:$0xff]  }
  0xa5   :  { %743 = vmatprep.subr.bf16.mxu0 %v3575_v46  ;;  %1543 = vmatpush1.bf16.msra.mxu1 %v3658_v0  ;;  %v3730_v46 = vld [vmem:[#allocation6 + $0x784] ss:$8 sps:$4 sm:$0xff]  }
  0xa6   :  { %1544 = vmatprep.subr.bf16.mxu1 %v3659_v1  ;;  %v3754_v0 = vld [vmem:[#allocation6 + $0x7c4] ss:$8 sps:$4 sm:$0xff]   ;;  %v3695_v1 = vld [vmem:[#allocation6 + $0x210] ss:$8 sps:$4 sm:$0xff]  }
  0xa8   :  { %744 = vmatpush1.bf16.msra.mxu0 %v3577_v49  ;;  %v3728_v49 = vld [vmem:[#allocation6 + $0x780] ss:$8 sps:$4 sm:$0xff]  }
  0xa9   :  { %745 = vmatprep.subr.bf16.mxu0 %v3580_v50  ;;  %1545 = vmatpush1.bf16.msra.mxu1 %v3664_v5  ;;  %v3736_v50 = vld [vmem:[#allocation6 + $0x794] ss:$8 sps:$4 sm:$0xff]   ;;  %v3701_v5 = vld [vmem:[#allocation6 + $0x220] ss:$8 sps:$4 sm:$0xff]  }
  0xaa   :  { %1546 = vmatprep.subr.bf16.mxu1 %v3665_v6  ;;  %v3709_v6 = vld [vmem:[#allocation6 + $0x234] ss:$8 sps:$4 sm:$0xff]  }
  0xac   :  { %746 = vmatpush1.bf16.msra.mxu0 %v3583_v53  ;;  %v3734_v53 = vld [vmem:[#allocation6 + $0x790] ss:$8 sps:$4 sm:$0xff]  }
  0xad   :  { %758 = vmatprep.subr.bf16.mxu0 %v3590_v54  ;;  %1547 = vmatpush1.bf16.msra.mxu1 %v3670_v9  ;;  %v3742_v54 = vld [vmem:[#allocation6 + $0x7a4] ss:$8 sps:$4 sm:$0xff]   ;;  %v3707_v9 = vld [vmem:[#allocation6 + $0x230] ss:$8 sps:$4 sm:$0xff]  }
  0xae   :  { %1548 = vmatprep.subr.bf16.mxu1 %v3671_v10  ;;  %v3715_v10 = vld [vmem:[#allocation6 + $0x244] ss:$8 sps:$4 sm:$0xff]  }
  0xaf   :  { %748 = vmatmul.mubr.bf16.vlgmr.msra.gmra.mrb[0].mxu0 %v3592_v57 }
  0xb0   :  { %759 = vmatpush1.bf16.msra.mxu0 %v3588_v58  ;;  %790 = vmatprep.mubr.bf16.mxu0 %v3688_v2  ;;  %v3748_v58 = vld [vmem:[#allocation6 + $0x7b4] ss:$8 sps:$4 sm:$0xff]  }
  0xb1   :  { %760 = vmatprep.subr.bf16.mxu0 %v3597_v59  ;;  %1549 = vmatpush1.bf16.msra.mxu1 %v3676_v13  ;;  %v4381_v59 = vld [vmem:[#allocation3 + $0x8] ss:$24 sps:$4 sm:$0xff]   ;;  %v3713_v13 = vld [vmem:[#allocation6 + $0x240] ss:$8 sps:$4 sm:$0xff]  }
  0xb2   :  { %1561 = vmatprep.subr.bf16.mxu1 %v3679_v14  ;;  %v3721_v14 = vld [vmem:[#allocation6 + $0x254] ss:$8 sps:$4 sm:$0xff]  }
  0xb4   :  { %761 = vmatpush1.bf16.msra.mxu0 %v3595_v62  ;;  %1551 = vmatmul.mubr.bf16.vlgmr.msra.gmra.mrb[0].mxu1 %v3592_v57  ;;  %v3740_v57 = vld [vmem:[#allocation6 + $0x7a0] ss:$8 sps:$4 sm:$0xff]   ;;  %v4383_v62 = vld [vmem:[#allocation3 + $0x14] ss:$24 sps:$4 sm:$0xff]  }
  0xb5   :  { %762 = vmatprep.subr.bf16.mxu0 %v3603_v63  ;;  %1562 = vmatpush1.bf16.msra.mxu1 %v3677_v17  ;;  %v3746_v63 = vld [vmem:[#allocation6 + $0x7b0] ss:$8 sps:$4 sm:$0xff]  }
  0xb6   :  { %1563 = vmatprep.subr.bf16.mxu1 %v3685_v18  ;;  %1593 = vmatprep.mubr.bf16.mxu1 %v3688_v2  ;;  %v3703_v2 = vld [vmem:[#allocation6 + $0x224] ss:$8 sps:$4 sm:$0xff]   ;;  %v3719_v17 = vld [vmem:[#allocation6 + $0x250] ss:$8 sps:$4 sm:$0xff]  }
  0xb7   :  { %v3727_v18 = vld [vmem:[#allocation6 + $0x264] ss:$8 sps:$4 sm:$0xff]  }
  0xb8   :  { %763 = vmatpush1.bf16.msra.mxu0 %v3601_v3  ;;  %v3752_v3 = vld [vmem:[#allocation6 + $0x7c0] ss:$8 sps:$4 sm:$0xff]  }
  0xb9   :  { %764 = vmatprep.subr.bf16.mxu0 %v3609_v4  ;;  %1564 = vmatpush1.bf16.msra.mxu1 %v3683_v21  ;;  %v3760_v4 = vld [vmem:[#allocation6 + $0x7d4] ss:$8 sps:$4 sm:$0xff]   ;;  %v3725_v21 = vld [vmem:[#allocation6 + $0x260] ss:$8 sps:$4 sm:$0xff]  }
  0xba   :  { %1565 = vmatprep.subr.bf16.mxu1 %v3694_v22  ;;  %v3733_v22 = vld [vmem:[#allocation6 + $0x274] ss:$8 sps:$4 sm:$0xff]  }
  0xbc   :  { %765 = vmatpush1.bf16.msra.mxu0 %v3607_v7  ;;  %v3758_v7 = vld [vmem:[#allocation6 + $0x7d0] ss:$8 sps:$4 sm:$0xff]  }
  0xbd   :  { %766 = vmatprep.subr.bf16.mxu0 %v3615_v8  ;;  %1566 = vmatpush1.bf16.msra.mxu1 %v3692_v25  ;;  %v3766_v8 = vld [vmem:[#allocation6 + $0x7e4] ss:$8 sps:$4 sm:$0xff]   ;;  %v3731_v25 = vld [vmem:[#allocation6 + $0x270] ss:$8 sps:$4 sm:$0xff]  }
  0xbe   :  { %1567 = vmatprep.subr.bf16.mxu1 %v3700_v26  ;;  %v3739_v26 = vld [vmem:[#allocation6 + $0x284] ss:$8 sps:$4 sm:$0xff]  }
  0xc0   :  { %767 = vmatpush1.bf16.msra.mxu0 %v3613_v11  ;;  %v3764_v11 = vld [vmem:[#allocation6 + $0x7e0] ss:$8 sps:$4 sm:$0xff]  }
  0xc1   :  { %768 = vmatprep.subr.bf16.mxu0 %v3621_v12  ;;  %1568 = vmatpush1.bf16.msra.mxu1 %v3698_v29  ;;  %v3772_v12 = vld [vmem:[#allocation6 + $0x7f4] ss:$8 sps:$4 sm:$0xff]   ;;  %v3737_v29 = vld [vmem:[#allocation6 + $0x280] ss:$8 sps:$4 sm:$0xff]  }
  0xc2   :  { %1569 = vmatprep.subr.bf16.mxu1 %v3706_v30  ;;  %v3745_v30 = vld [vmem:[#allocation6 + $0x294] ss:$8 sps:$4 sm:$0xff]  }
  0xc4   :  { %769 = vmatpush1.bf16.msra.mxu0 %v3619_v15  ;;  %v3770_v15 = vld [vmem:[#allocation6 + $0x7f0] ss:$8 sps:$4 sm:$0xff]  }
  0xc5   :  { %770 = vmatprep.subr.bf16.mxu0 %v3627_v16  ;;  %1570 = vmatpush1.bf16.msra.mxu1 %v3704_v33  ;;  %v3778_v16 = vld [vmem:[#allocation6 + $0x804] ss:$8 sps:$4 sm:$0xff]   ;;  %v3743_v33 = vld [vmem:[#allocation6 + $0x290] ss:$8 sps:$4 sm:$0xff]  }
  0xc6   :  { %1571 = vmatprep.subr.bf16.mxu1 %v3712_v34  ;;  %v3751_v34 = vld [vmem:[#allocation6 + $0x2a4] ss:$8 sps:$4 sm:$0xff]  }
  0xc8   :  { %771 = vmatpush1.bf16.msra.mxu0 %v3625_v19  ;;  %v3776_v19 = vld [vmem:[#allocation6 + $0x800] ss:$8 sps:$4 sm:$0xff]  }
  0xc9   :  { %772 = vmatprep.subr.bf16.mxu0 %v3633_v20  ;;  %1572 = vmatpush1.bf16.msra.mxu1 %v3710_v37  ;;  %v3787_v20 = vld [vmem:[#allocation6 + $0x814] ss:$8 sps:$4 sm:$0xff]   ;;  %v3749_v37 = vld [vmem:[#allocation6 + $0x2a0] ss:$8 sps:$4 sm:$0xff]  }
  0xca   :  { %1573 = vmatprep.subr.bf16.mxu1 %v3718_v38  ;;  %v3757_v38 = vld [vmem:[#allocation6 + $0x2b4] ss:$8 sps:$4 sm:$0xff]  }
  0xcc   :  { %773 = vmatpush1.bf16.msra.mxu0 %v3631_v23  ;;  %v3785_v23 = vld [vmem:[#allocation6 + $0x810] ss:$8 sps:$4 sm:$0xff]  }
  0xcd   :  { %774 = vmatprep.subr.bf16.mxu0 %v3639_v24  ;;  %1574 = vmatpush1.bf16.msra.mxu1 %v3716_v41  ;;  %v3793_v24 = vld [vmem:[#allocation6 + $0x824] ss:$8 sps:$4 sm:$0xff]   ;;  %v3755_v41 = vld [vmem:[#allocation6 + $0x2b0] ss:$8 sps:$4 sm:$0xff]  }
  0xce   :  { %1575 = vmatprep.subr.bf16.mxu1 %v3724_v42  ;;  %v3763_v42 = vld [vmem:[#allocation6 + $0x2c4] ss:$8 sps:$4 sm:$0xff]  }
  0xd0   :  { %775 = vmatpush1.bf16.msra.mxu0 %v3637_v27  ;;  %v3791_v27 = vld [vmem:[#allocation6 + $0x820] ss:$8 sps:$4 sm:$0xff]  }
  0xd1   :  { %776 = vmatprep.subr.bf16.mxu0 %v3645_v28  ;;  %1576 = vmatpush1.bf16.msra.mxu1 %v3722_v45  ;;  %v3799_v28 = vld [vmem:[#allocation6 + $0x834] ss:$8 sps:$4 sm:$0xff]   ;;  %v3761_v45 = vld [vmem:[#allocation6 + $0x2c0] ss:$8 sps:$4 sm:$0xff]  }
  0xd2   :  { %1577 = vmatprep.subr.bf16.mxu1 %v3730_v46  ;;  %v3769_v46 = vld [vmem:[#allocation6 + $0x2d4] ss:$8 sps:$4 sm:$0xff]  }
  0xd4   :  { %777 = vmatpush1.bf16.msra.mxu0 %v3643_v31  ;;  %v3797_v31 = vld [vmem:[#allocation6 + $0x830] ss:$8 sps:$4 sm:$0xff]  }
  0xd5   :  { %778 = vmatprep.subr.bf16.mxu0 %v3651_v32  ;;  %1578 = vmatpush1.bf16.msra.mxu1 %v3728_v49  ;;  %v3805_v32 = vld [vmem:[#allocation6 + $0x844] ss:$8 sps:$4 sm:$0xff]   ;;  %v3767_v49 = vld [vmem:[#allocation6 + $0x2d0] ss:$8 sps:$4 sm:$0xff]  }
  0xd6   :  { %1579 = vmatprep.subr.bf16.mxu1 %v3736_v50  ;;  %v3775_v50 = vld [vmem:[#allocation6 + $0x2e4] ss:$8 sps:$4 sm:$0xff]  }
  0xd8   :  { %779 = vmatpush1.bf16.msra.mxu0 %v3649_v35  ;;  %v3803_v35 = vld [vmem:[#allocation6 + $0x840] ss:$8 sps:$4 sm:$0xff]  }
  0xd9   :  { %780 = vmatprep.subr.bf16.mxu0 %v3657_v36  ;;  %1580 = vmatpush1.bf16.msra.mxu1 %v3734_v53  ;;  %v3811_v36 = vld [vmem:[#allocation6 + $0x854] ss:$8 sps:$4 sm:$0xff]   ;;  %v3773_v53 = vld [vmem:[#allocation6 + $0x2e0] ss:$8 sps:$4 sm:$0xff]  }
  0xda   :  { %1581 = vmatprep.subr.bf16.mxu1 %v3742_v54  ;;  %v3781_v54 = vld [vmem:[#allocation6 + $0x2f4] ss:$8 sps:$4 sm:$0xff]  }
  0xdc   :  { %781 = vmatpush1.bf16.msra.mxu0 %v3655_v39  ;;  %v3809_v39 = vld [vmem:[#allocation6 + $0x850] ss:$8 sps:$4 sm:$0xff]  }
  0xdd   :  { %782 = vmatprep.subr.bf16.mxu0 %v3663_v40  ;;  %1582 = vmatpush1.bf16.msra.mxu1 %v3740_v57  ;;  %v3817_v40 = vld [vmem:[#allocation6 + $0x864] ss:$8 sps:$4 sm:$0xff]   ;;  %v3779_v57 = vld [vmem:[#allocation6 + $0x2f0] ss:$8 sps:$4 sm:$0xff]  }
  0xde   :  { %1583 = vmatprep.subr.bf16.mxu1 %v3748_v58  ;;  %v3790_v58 = vld [vmem:[#allocation6 + $0x304] ss:$8 sps:$4 sm:$0xff]  }
  0xe0   :  { %783 = vmatpush1.bf16.msra.mxu0 %v3661_v43  ;;  %v3815_v43 = vld [vmem:[#allocation6 + $0x860] ss:$8 sps:$4 sm:$0xff]  }
  0xe1   :  { %784 = vmatprep.subr.bf16.mxu0 %v3669_v44  ;;  %1584 = vmatpush1.bf16.msra.mxu1 %v3746_v63  ;;  %v3823_v44 = vld [vmem:[#allocation6 + $0x874] ss:$8 sps:$4 sm:$0xff]   ;;  %v4389_v63 = vld [vmem:[#allocation3 + $0x10] ss:$24 sps:$4 sm:$0xff]  }
  0xe2   :  { %1585 = vmatprep.subr.bf16.mxu1 %v3754_v0  ;;  %v3788_v0 = vld [vmem:[#allocation6 + $0x300] ss:$8 sps:$4 sm:$0xff]  }
  0xe4   :  { %785 = vmatpush1.bf16.msra.mxu0 %v3667_v47  ;;  %v3821_v47 = vld [vmem:[#allocation6 + $0x870] ss:$8 sps:$4 sm:$0xff]  }
  0xe5   :  { %786 = vmatprep.subr.bf16.mxu0 %v3675_v48  ;;  %1586 = vmatpush1.bf16.msra.mxu1 %v3752_v3  ;;  %v3829_v48 = vld [vmem:[#allocation6 + $0x884] ss:$8 sps:$4 sm:$0xff]  }
  0xe6   :  { %1587 = vmatprep.subr.bf16.mxu1 %v3760_v4  ;;  %v3853_v3 = vld [vmem:[#allocation6 + $0x8c4] ss:$8 sps:$4 sm:$0xff]   ;;  %v3794_v4 = vld [vmem:[#allocation6 + $0x310] ss:$8 sps:$4 sm:$0xff]  }
  0xe8   :  { %787 = vmatpush1.bf16.msra.mxu0 %v3673_v51  ;;  %v3827_v51 = vld [vmem:[#allocation6 + $0x880] ss:$8 sps:$4 sm:$0xff]  }
  0xe9   :  { %788 = vmatprep.subr.bf16.mxu0 %v3682_v52  ;;  %1588 = vmatpush1.bf16.msra.mxu1 %v3758_v7  ;;  %v3835_v52 = vld [vmem:[#allocation6 + $0x894] ss:$8 sps:$4 sm:$0xff]   ;;  %v3851_v7 = vld [vmem:[#allocation6 + $0x8c0] ss:$8 sps:$4 sm:$0xff]  }
  0xea   :  { %1589 = vmatprep.subr.bf16.mxu1 %v3766_v8  ;;  %v3859_v8 = vld [vmem:[#allocation6 + $0x8d4] ss:$8 sps:$4 sm:$0xff]  }
  0xec   :  { %789 = vmatpush1.bf16.msra.mxu0 %v3680_v55  ;;  %v3833_v55 = vld [vmem:[#allocation6 + $0x890] ss:$8 sps:$4 sm:$0xff]  }
  0xed   :  { %801 = vmatprep.subr.bf16.mxu0 %v3691_v56  ;;  %1590 = vmatpush1.bf16.msra.mxu1 %v3764_v11  ;;  %v3841_v56 = vld [vmem:[#allocation6 + $0x8a4] ss:$8 sps:$4 sm:$0xff]   ;;  %v3857_v11 = vld [vmem:[#allocation6 + $0x8d0] ss:$8 sps:$4 sm:$0xff]  }
  0xee   :  { %1591 = vmatprep.subr.bf16.mxu1 %v3772_v12  ;;  %v3865_v12 = vld [vmem:[#allocation6 + $0x8e4] ss:$8 sps:$4 sm:$0xff]  }
  0xef   :  { %791 = vmatmul.mubr.bf16.vlgmr.msra.gmra.mrb[0].mxu0 %v4381_v59 }
  0xf0   :  { %802 = vmatpush1.bf16.msra.mxu0 %v3689_v60  ;;  %833 = vmatprep.mubr.bf16.mxu0 %v4383_v62  ;;  %v3839_v60 = vld [vmem:[#allocation6 + $0x8a0] ss:$8 sps:$4 sm:$0xff]  }
  0xf1   :  { %803 = vmatprep.subr.bf16.mxu0 %v3697_v61  ;;  %1592 = vmatpush1.bf16.msra.mxu1 %v3770_v15  ;;  %v3847_v61 = vld [vmem:[#allocation6 + $0x8b4] ss:$8 sps:$4 sm:$0xff]   ;;  %v3863_v15 = vld [vmem:[#allocation6 + $0x8e0] ss:$8 sps:$4 sm:$0xff]  }
  0xf2   :  { %1604 = vmatprep.subr.bf16.mxu1 %v3778_v16  ;;  %v3871_v16 = vld [vmem:[#allocation6 + $0x8f4] ss:$8 sps:$4 sm:$0xff]  }
  0xf4   :  { %804 = vmatpush1.bf16.msra.mxu0 %v3695_v1  ;;  %1594 = vmatmul.mubr.bf16.vlgmr.msra.gmra.mrb[0].mxu1 %v4381_v59  ;;  %v3796_v1 = vld [vmem:[#allocation6 + $0x314] ss:$8 sps:$4 sm:$0xff]  }
  0xf5   :  { %805 = vmatprep.subr.bf16.mxu0 %v3703_v2  ;;  %1605 = vmatpush1.bf16.msra.mxu1 %v3776_v19  ;;  %v3845_v2 = vld [vmem:[#allocation6 + $0x8b0] ss:$8 sps:$4 sm:$0xff]  }
  0xf6   :  { %1606 = vmatprep.subr.bf16.mxu1 %v3787_v20  ;;  %1636 = vmatprep.mubr.bf16.mxu1 %v4383_v62  ;;  %v3869_v19 = vld [vmem:[#allocation6 + $0x8f0] ss:$8 sps:$4 sm:$0xff]  }
  0xf7   :  { %v3818_v20 = vld [vmem:[#allocation6 + $0x350] ss:$8 sps:$4 sm:$0xff]  }
  0xf8   :  { %806 = vmatpush1.bf16.msra.mxu0 %v3701_v5  ;;  %v4082_v5 = vld [vmem:[#allocation3 + $0x4] ss:$24 sps:$4 sm:$0xff]  }
  0xf9   :  { %807 = vmatprep.subr.bf16.mxu0 %v3709_v6  ;;  %1607 = vmatpush1.bf16.msra.mxu1 %v3785_v23  ;;  %v3802_v6 = vld [vmem:[#allocation6 + $0x324] ss:$8 sps:$4 sm:$0xff]   ;;  %v3832_v23 = vld [vmem:[#allocation6 + $0x374] ss:$8 sps:$4 sm:$0xff]  }
  0xfa   :  { %1608 = vmatprep.subr.bf16.mxu1 %v3793_v24  ;;  %v3830_v24 = vld [vmem:[#allocation6 + $0x370] ss:$8 sps:$4 sm:$0xff]  }
  0xfc   :  { %808 = vmatpush1.bf16.msra.mxu0 %v3707_v9  ;;  %v3800_v9 = vld [vmem:[#allocation6 + $0x320] ss:$8 sps:$4 sm:$0xff]  }
  0xfd   :  { %809 = vmatprep.subr.bf16.mxu0 %v3715_v10  ;;  %1609 = vmatpush1.bf16.msra.mxu1 %v3791_v27  ;;  %v3808_v10 = vld [vmem:[#allocation6 + $0x334] ss:$8 sps:$4 sm:$0xff]  }
  0xfe   :  { %1610 = vmatprep.subr.bf16.mxu1 %v3799_v28  ;;  %v3844_v27 = vld [vmem:[#allocation6 + $0x394] ss:$8 sps:$4 sm:$0xff]   ;;  %v3842_v28 = vld [vmem:[#allocation6 + $0x390] ss:$8 sps:$4 sm:$0xff]  }
 0x100   :  { %810 = vmatpush1.bf16.msra.mxu0 %v3713_v13  ;;  %v3806_v13 = vld [vmem:[#allocation6 + $0x330] ss:$8 sps:$4 sm:$0xff]  }
 0x101   :  { %811 = vmatprep.subr.bf16.mxu0 %v3721_v14  ;;  %1611 = vmatpush1.bf16.msra.mxu1 %v3797_v31  ;;  %v3814_v14 = vld [vmem:[#allocation6 + $0x344] ss:$8 sps:$4 sm:$0xff]   ;;  %v3856_v31 = vld [vmem:[#allocation6 + $0x3b4] ss:$8 sps:$4 sm:$0xff]  }
 0x102   :  { %1612 = vmatprep.subr.bf16.mxu1 %v3805_v32  ;;  %v3854_v32 = vld [vmem:[#allocation6 + $0x3b0] ss:$8 sps:$4 sm:$0xff]  }
 0x104   :  { %812 = vmatpush1.bf16.msra.mxu0 %v3719_v17  ;;  %v3812_v17 = vld [vmem:[#allocation6 + $0x340] ss:$8 sps:$4 sm:$0xff]  }
 0x105   :  { %813 = vmatprep.subr.bf16.mxu0 %v3727_v18  ;;  %1613 = vmatpush1.bf16.msra.mxu1 %v3803_v35  ;;  %v3820_v18 = vld [vmem:[#allocation6 + $0x354] ss:$8 sps:$4 sm:$0xff]  }
 0x106   :  { %1614 = vmatprep.subr.bf16.mxu1 %v3811_v36  ;;  %v3868_v35 = vld [vmem:[#allocation6 + $0x3d4] ss:$8 sps:$4 sm:$0xff]   ;;  %v3866_v36 = vld [vmem:[#allocation6 + $0x3d0] ss:$8 sps:$4 sm:$0xff]  }
 0x108   :  { %814 = vmatpush1.bf16.msra.mxu0 %v3725_v21  ;;  %v3826_v21 = vld [vmem:[#allocation6 + $0x364] ss:$8 sps:$4 sm:$0xff]  }
 0x109   :  { %815 = vmatprep.subr.bf16.mxu0 %v3733_v22  ;;  %1615 = vmatpush1.bf16.msra.mxu1 %v3809_v39  ;;  %v3824_v22 = vld [vmem:[#allocation6 + $0x360] ss:$8 sps:$4 sm:$0xff]   ;;  %v3877_v39 = vld [vmem:[#allocation6 + $0x3f4] ss:$8 sps:$4 sm:$0xff]  }
 0x10a   :  { %1616 = vmatprep.subr.bf16.mxu1 %v3817_v40  ;;  %v3875_v40 = vld [vmem:[#allocation6 + $0x3f0] ss:$8 sps:$4 sm:$0xff]  }
 0x10c   :  { %816 = vmatpush1.bf16.msra.mxu0 %v3731_v25  ;;  %v3838_v25 = vld [vmem:[#allocation6 + $0x384] ss:$8 sps:$4 sm:$0xff]  }
 0x10d   :  { %817 = vmatprep.subr.bf16.mxu0 %v3739_v26  ;;  %1617 = vmatpush1.bf16.msra.mxu1 %v3815_v43  ;;  %v3836_v26 = vld [vmem:[#allocation6 + $0x380] ss:$8 sps:$4 sm:$0xff]  }
 0x10e   :  { %1618 = vmatprep.subr.bf16.mxu1 %v3823_v44  ;;  %v4395_v43 = vld [vmem:[#allocation9] ss:$8 sps:$4 sm:$0xff]  }
 0x10f   :  { %v3878_v44 = vld [vmem:[#allocation6 + $0x400] ss:$8 sps:$4 sm:$0xff]  }
 0x110   :  { %818 = vmatpush1.bf16.msra.mxu0 %v3737_v29  ;;  %v3850_v29 = vld [vmem:[#allocation6 + $0x3a4] ss:$8 sps:$4 sm:$0xff]  }
 0x111   :  { %819 = vmatprep.subr.bf16.mxu0 %v3745_v30  ;;  %1619 = vmatpush1.bf16.msra.mxu1 %v3821_v47  ;;  %v3848_v30 = vld [vmem:[#allocation6 + $0x3a0] ss:$8 sps:$4 sm:$0xff]   ;;  %v4401_v47 = vld [vmem:[#allocation9 + $0x10] ss:$8 sps:$4 sm:$0xff]  }
 0x112   :  { %1620 = vmatprep.subr.bf16.mxu1 %v3829_v48  ;;  %v4083_v48 = vld [vmem:[#allocation3] ss:$24 sps:$4 sm:$0xff]  }
 0x114   :  { %820 = vmatpush1.bf16.msra.mxu0 %v3743_v33  ;;  %v3862_v33 = vld [vmem:[#allocation6 + $0x3c4] ss:$8 sps:$4 sm:$0xff]  }
 0x115   :  { %821 = vmatprep.subr.bf16.mxu0 %v3751_v34  ;;  %1621 = vmatpush1.bf16.msra.mxu1 %v3827_v51  ;;  %v3860_v34 = vld [vmem:[#allocation6 + $0x3c0] ss:$8 sps:$4 sm:$0xff]   ;;  %v3881_v51 = vld [vmem:[#allocation6 + $0x410] ss:$8 sps:$4 sm:$0xff]  }
 0x116   :  { %1622 = vmatprep.subr.bf16.mxu1 %v3835_v52  ;;  %v4084_v52 = vld [vmem:[#allocation3 + $0xc] ss:$24 sps:$4 sm:$0xff]  }
 0x118   :  { %822 = vmatpush1.bf16.msra.mxu0 %v3749_v37  ;;  %v3874_v37 = vld [vmem:[#allocation6 + $0x3e4] ss:$8 sps:$4 sm:$0xff]  }
 0x119   :  { %823 = vmatprep.subr.bf16.mxu0 %v3757_v38  ;;  %1623 = vmatpush1.bf16.msra.mxu1 %v3833_v55  ;;  %v3872_v38 = vld [vmem:[#allocation6 + $0x3e0] ss:$8 sps:$4 sm:$0xff]   ;;  %v4259_v55 = vmov 0  }
 0x11a   :  { %1624 = vmatprep.subr.bf16.mxu1 %v3841_v56  ;;  %v4414_v56 = vld [vmem:[#allocation9 + $0x30] ss:$8 sps:$4 sm:$0xff]  }
 0x11c   :  { %824 = vmatpush1.bf16.msra.mxu0 %v3755_v41  ;;  %v4393_v41 = vld [vmem:[#allocation9 + $0x4] ss:$8 sps:$4 sm:$0xff]  }
 0x11d   :  { %825 = vmatprep.subr.bf16.mxu0 %v3763_v42  ;;  %1625 = vmatpush1.bf16.msra.mxu1 %v3839_v60  ;;  %v3880_v42 = vld [vmem:[#allocation6 + $0x404] ss:$8 sps:$4 sm:$0xff]   ;;  %v3887_v60 = vld [vmem:[#allocation6 + $0x430] ss:$8 sps:$4 sm:$0xff]  }
 0x11e   :  { %1626 = vmatprep.subr.bf16.mxu1 %v3847_v61  ;;  %v3892_v61 = vld [vmem:[#allocation6 + $0x444] ss:$8 sps:$4 sm:$0xff]  }
 0x120   :  { %826 = vmatpush1.bf16.msra.mxu0 %v3761_v45  ;;  %v4399_v45 = vld [vmem:[#allocation9 + $0x14] ss:$8 sps:$4 sm:$0xff]  }
 0x121   :  { %827 = vmatprep.subr.bf16.mxu0 %v3769_v46  ;;  %1627 = vmatpush1.bf16.msra.mxu1 %v3845_v2  ;;  %v3883_v46 = vld [vmem:[#allocation6 + $0x414] ss:$8 sps:$4 sm:$0xff]   ;;  %v3893_v2 = vld [vmem:[#allocation6 + $0x450] ss:$8 sps:$4 sm:$0xff]  }
 0x122   :  { %1628 = vmatprep.subr.bf16.mxu1 %v3853_v3  ;;  %v3898_v3 = vld [vmem:[#allocation6 + $0x464] ss:$8 sps:$4 sm:$0xff]  }
 0x124   :  { %828 = vmatpush1.bf16.msra.mxu0 %v3767_v49  ;;  %v4405_v49 = vld [vmem:[#allocation9 + $0x24] ss:$8 sps:$4 sm:$0xff]  }
 0x125   :  { %829 = vmatprep.subr.bf16.mxu0 %v3775_v50  ;;  %1629 = vmatpush1.bf16.msra.mxu1 %v3851_v7  ;;  %v4407_v50 = vld [vmem:[#allocation9 + $0x20] ss:$8 sps:$4 sm:$0xff]  }
 0x126   :  { %1630 = vmatprep.subr.bf16.mxu1 %v3859_v8  ;;  %v3904_v7 = vld [vmem:[#allocation6 + $0x484] ss:$8 sps:$4 sm:$0xff]   ;;  %v3902_v8 = vld [vmem:[#allocation6 + $0x480] ss:$8 sps:$4 sm:$0xff]  }
 0x128   :  { %830 = vmatpush1.bf16.msra.mxu0 %v3773_v53  ;;  %v4409_v53 = vld [vmem:[#allocation9 + $0x34] ss:$8 sps:$4 sm:$0xff]  }
 0x129   :  { %831 = vmatprep.subr.bf16.mxu0 %v3781_v54  ;;  %1631 = vmatpush1.bf16.msra.mxu1 %v3857_v11  ;;  %v3886_v54 = vld [vmem:[#allocation6 + $0x424] ss:$8 sps:$4 sm:$0xff]  }
 0x12a   :  { %1632 = vmatprep.subr.bf16.mxu1 %v3865_v12  ;;  %v3910_v11 = vld [vmem:[#allocation6 + $0x4a4] ss:$8 sps:$4 sm:$0xff]   ;;  %v3908_v12 = vld [vmem:[#allocation6 + $0x4a0] ss:$8 sps:$4 sm:$0xff]  }
 0x12c   :  { %832 = vmatpush1.bf16.msra.mxu0 %v3779_v57  ;;  %v3884_v57 = vld [vmem:[#allocation6 + $0x420] ss:$8 sps:$4 sm:$0xff]  }
 0x12d   :  { %2160 = vmatprep.subr.bf16.mxu0 %v3790_v58  ;;  %1633 = vmatpush1.bf16.msra.mxu1 %v3863_v15  ;;  %v3889_v58 = vld [vmem:[#allocation6 + $0x434] ss:$8 sps:$4 sm:$0xff]   ;;  %v3916_v15 = vld [vmem:[#allocation6 + $0x4c4] ss:$8 sps:$4 sm:$0xff]  }
 0x12e   :  { %1634 = vmatprep.subr.bf16.mxu1 %v3871_v16  ;;  %v3914_v16 = vld [vmem:[#allocation6 + $0x4c0] ss:$8 sps:$4 sm:$0xff]  }
 0x12f   :  { %834 = vmatmul.mubr.bf16.vlgmr.msra.gmra.mrb[0].mxu0 %v4389_v63 }
 0x130   :  { %2161 = vmatpush1.bf16.msra.mxu0 %v3788_v0  ;;  %2192 = vmatprep.mubr.bf16.mxu0 %v4082_v5  ;;  %v3890_v0 = vld [vmem:[#allocation6 + $0x440] ss:$8 sps:$4 sm:$0xff]   ;;  %v3901_v5 = vld [vmem:[#allocation6 + $0x474] ss:$8 sps:$4 sm:$0xff]  }
 0x131   :  { %2162 = vmatprep.subr.bf16.mxu0 %v3796_v1  ;;  %1635 = vmatpush1.bf16.msra.mxu1 %v3869_v19  ;;  %v3895_v1 = vld [vmem:[#allocation6 + $0x454] ss:$8 sps:$4 sm:$0xff]   ;;  %v3922_v19 = vld [vmem:[#allocation6 + $0x4e4] ss:$8 sps:$4 sm:$0xff]  }
 0x132   :  { %2367 = vmatprep.subr.bf16.mxu1 %v4393_v41 }
 0x134   :  { %2163 = vmatpush1.bf16.msra.mxu0 %v3794_v4  ;;  %1637 = vmatmul.mubr.bf16.vlgmr.msra.gmra.mrb[0].mxu1 %v4389_v63  ;;  %v3896_v4 = vld [vmem:[#allocation6 + $0x460] ss:$8 sps:$4 sm:$0xff]  }
 0x135   :  { %2164 = vmatprep.subr.bf16.mxu0 %v3802_v6  ;;  %2368 = vmatpush1.bf16.msra.mxu1 %v4395_v43  ;;  %v3899_v6 = vld [vmem:[#allocation6 + $0x470] ss:$8 sps:$4 sm:$0xff]  }
 0x136   :  { %2369 = vmatprep.subr.bf16.mxu1 %v4399_v45  ;;  %2399 = vmatprep.mubr.bf16.mxu1 %v4259_v55 }
 0x138   :  { %2165 = vmatpush1.bf16.msra.mxu0 %v3800_v9  ;;  %v3907_v9 = vld [vmem:[#allocation6 + $0x494] ss:$8 sps:$4 sm:$0xff]  }
 0x139   :  { %2166 = vmatprep.subr.bf16.mxu0 %v3808_v10  ;;  %2370 = vmatpush1.bf16.msra.mxu1 %v4401_v47  ;;  %v3905_v10 = vld [vmem:[#allocation6 + $0x490] ss:$8 sps:$4 sm:$0xff]  }
 0x13a   :  { %2371 = vmatprep.subr.bf16.mxu1 %v4405_v49 }
 0x13c   :  { %2167 = vmatpush1.bf16.msra.mxu0 %v3806_v13  ;;  %v3913_v13 = vld [vmem:[#allocation6 + $0x4b4] ss:$8 sps:$4 sm:$0xff]  }
 0x13d   :  { %2168 = vmatprep.subr.bf16.mxu0 %v3814_v14  ;;  %2372 = vmatpush1.bf16.msra.mxu1 %v4407_v50  ;;  %v3911_v14 = vld [vmem:[#allocation6 + $0x4b0] ss:$8 sps:$4 sm:$0xff]  }
 0x13e   :  { %2373 = vmatprep.subr.bf16.mxu1 %v4409_v53 }
 0x140   :  { %2169 = vmatpush1.bf16.msra.mxu0 %v3812_v17  ;;  %v3919_v17 = vld [vmem:[#allocation6 + $0x4d4] ss:$8 sps:$4 sm:$0xff]  }
 0x141   :  { %2170 = vmatprep.subr.bf16.mxu0 %v3820_v18  ;;  %2374 = vmatpush1.bf16.msra.mxu1 %v4414_v56  ;;  %v3917_v18 = vld [vmem:[#allocation6 + $0x4d0] ss:$8 sps:$4 sm:$0xff]  }
 0x142   :  { %2441 = vmatprep.subr.bf16.mxu1 %v4393_v41 }
 0x144   :  { %2171 = vmatpush1.bf16.msra.mxu0 %v3818_v20  ;;  %2400 = vmatmul.mubr.bf16.vlgmr.msra.gmra.mrb[4].mxu1 %v4259_v55  ;;  %v3920_v20 = vld [vmem:[#allocation6 + $0x4e0] ss:$8 sps:$4 sm:$0xff]  }
 0x145   :  { %2172 = vmatprep.subr.bf16.mxu0 %v3826_v21  ;;  %2442 = vmatpush1.bf16.msra.mxu1 %v4395_v43  ;;  %v3925_v21 = vld [vmem:[#allocation6 + $0x4f4] ss:$8 sps:$4 sm:$0xff]  }
 0x146   :  { %2473 = vmatprep.mubr.bf16.mxu1 %v4259_v55  ;;  %2443 = vmatprep.subr.bf16.mxu1 %v4399_v45 }
 0x148   :  { %2173 = vmatpush1.bf16.msra.mxu0 %v3824_v22  ;;  %v3923_v22 = vld [vmem:[#allocation6 + $0x4f0] ss:$8 sps:$4 sm:$0xff]  }
 0x149   :  { %2174 = vmatprep.subr.bf16.mxu0 %v3832_v23  ;;  %2444 = vmatpush1.bf16.msra.mxu1 %v4401_v47  ;;  %v3928_v23 = vld [vmem:[#allocation6 + $0x504] ss:$8 sps:$4 sm:$0xff]  }
 0x14a   :  { %2445 = vmatprep.subr.bf16.mxu1 %v4405_v49 }
 0x14c   :  { %2175 = vmatpush1.bf16.msra.mxu0 %v3830_v24  ;;  %v3926_v24 = vld [vmem:[#allocation6 + $0x500] ss:$8 sps:$4 sm:$0xff]  }
 0x14d   :  { %2176 = vmatprep.subr.bf16.mxu0 %v3838_v25  ;;  %2446 = vmatpush1.bf16.msra.mxu1 %v4407_v50  ;;  %v3931_v25 = vld [vmem:[#allocation6 + $0x514] ss:$8 sps:$4 sm:$0xff]  }
 0x14e   :  { %2447 = vmatprep.subr.bf16.mxu1 %v4409_v53 }
 0x150   :  { %2177 = vmatpush1.bf16.msra.mxu0 %v3836_v26  ;;  %v3929_v26 = vld [vmem:[#allocation6 + $0x510] ss:$8 sps:$4 sm:$0xff]  }
 0x151   :  { %2178 = vmatprep.subr.bf16.mxu0 %v3844_v27  ;;  %2448 = vmatpush1.bf16.msra.mxu1 %v4414_v56  ;;  %v3934_v27 = vld [vmem:[#allocation6 + $0x524] ss:$8 sps:$4 sm:$0xff]  }
 0x152   :  { %2525 = vmatprep.subr.bf16.mxu1 %v4393_v41 }
 0x154   :  { %2179 = vmatpush1.bf16.msra.mxu0 %v3842_v28  ;;  %v3932_v28 = vld [vmem:[#allocation6 + $0x520] ss:$8 sps:$4 sm:$0xff]  }
 0x155   :  { %2180 = vmatprep.subr.bf16.mxu0 %v3850_v29  ;;  %v3937_v29 = vld [vmem:[#allocation6 + $0x534] ss:$8 sps:$4 sm:$0xff]  }
 0x158   :  { %2181 = vmatpush1.bf16.msra.mxu0 %v3848_v30  ;;  %v3935_v30 = vld [vmem:[#allocation6 + $0x530] ss:$8 sps:$4 sm:$0xff]  }
 0x159   :  { %2182 = vmatprep.subr.bf16.mxu0 %v3856_v31  ;;  %v3940_v31 = vld [vmem:[#allocation6 + $0x544] ss:$8 sps:$4 sm:$0xff]  }
 0x15c   :  { %2183 = vmatpush1.bf16.msra.mxu0 %v3854_v32  ;;  %v3938_v32 = vld [vmem:[#allocation6 + $0x540] ss:$8 sps:$4 sm:$0xff]  }
 0x15d   :  { %2184 = vmatprep.subr.bf16.mxu0 %v3862_v33  ;;  %v3943_v33 = vld [vmem:[#allocation6 + $0x554] ss:$8 sps:$4 sm:$0xff]  }
 0x160   :  { %2185 = vmatpush1.bf16.msra.mxu0 %v3860_v34  ;;  %v3946_v34 = vld [vmem:[#allocation6 + $0x564] ss:$8 sps:$4 sm:$0xff]  }
 0x161   :  { %2186 = vmatprep.subr.bf16.mxu0 %v3868_v35  ;;  %v3949_v35 = vld [vmem:[#allocation6 + $0x574] ss:$8 sps:$4 sm:$0xff]  }
 0x164   :  { %2187 = vmatpush1.bf16.msra.mxu0 %v3866_v36  ;;  %v3947_v36 = vld [vmem:[#allocation6 + $0x570] ss:$8 sps:$4 sm:$0xff]  }
 0x165   :  { %2188 = vmatprep.subr.bf16.mxu0 %v3874_v37  ;;  %v3952_v37 = vld [vmem:[#allocation6 + $0x584] ss:$8 sps:$4 sm:$0xff]  }
 0x168   :  { %2189 = vmatpush1.bf16.msra.mxu0 %v3872_v38  ;;  %v3950_v38 = vld [vmem:[#allocation6 + $0x580] ss:$8 sps:$4 sm:$0xff]  }
 0x169   :  { %2190 = vmatprep.subr.bf16.mxu0 %v3877_v39  ;;  %v3955_v39 = vld [vmem:[#allocation6 + $0x594] ss:$8 sps:$4 sm:$0xff]  }
 0x16c   :  { %2191 = vmatpush1.bf16.msra.mxu0 %v3875_v40  ;;  %v3953_v40 = vld [vmem:[#allocation6 + $0x590] ss:$8 sps:$4 sm:$0xff]  }
 0x16d   :  { %2203 = vmatprep.subr.bf16.mxu0 %v3880_v42  ;;  %v3958_v42 = vld [vmem:[#allocation6 + $0x5a4] ss:$8 sps:$4 sm:$0xff]  }
 0x16f   :  { %2193 = vmatmul.mubr.bf16.vlgmr.msra.gmra.mrb[4].mxu0 %v4083_v48  ;;  %v3959_v48 = vld [vmem:[#allocation6 + $0x5b0] ss:$8 sps:$4 sm:$0xff]  }
 0x170   :  { %2204 = vmatpush1.bf16.msra.mxu0 %v3878_v44  ;;  %2235 = vmatprep.mubr.bf16.mxu0 %v4084_v52  ;;  %v3956_v44 = vld [vmem:[#allocation6 + $0x5a0] ss:$8 sps:$4 sm:$0xff]  }
 0x171   :  { %2205 = vmatprep.subr.bf16.mxu0 %v3883_v46  ;;  %v3961_v46 = vld [vmem:[#allocation6 + $0x5b4] ss:$8 sps:$4 sm:$0xff]   ;;  %v3962_v52 = vld [vmem:[#allocation6 + $0x5c0] ss:$8 sps:$4 sm:$0xff]  }
 0x174   :  { %2206 = vmatpush1.bf16.msra.mxu0 %v3881_v51  ;;  %v3964_v51 = vld [vmem:[#allocation6 + $0x5c4] ss:$8 sps:$4 sm:$0xff]  }
 0x175   :  { %2207 = vmatprep.subr.bf16.mxu0 %v3886_v54  ;;  %v3967_v54 = vld [vmem:[#allocation6 + $0x5d4] ss:$8 sps:$4 sm:$0xff]  }
 0x178   :  { %2208 = vmatpush1.bf16.msra.mxu0 %v3884_v57  ;;  %v3965_v57 = vld [vmem:[#allocation6 + $0x5d0] ss:$8 sps:$4 sm:$0xff]  }
 0x179   :  { %2209 = vmatprep.subr.bf16.mxu0 %v3889_v58  ;;  %v3970_v58 = vld [vmem:[#allocation6 + $0x5e4] ss:$8 sps:$4 sm:$0xff]  }
 0x17c   :  { %2210 = vmatpush1.bf16.msra.mxu0 %v3887_v60  ;;  %v3968_v60 = vld [vmem:[#allocation6 + $0x5e0] ss:$8 sps:$4 sm:$0xff]  }
 0x17d   :  { %2211 = vmatprep.subr.bf16.mxu0 %v3892_v61  ;;  %v3975_v61 = vld [vmem:[#allocation6 + $0x5f4] ss:$8 sps:$4 sm:$0xff]  }
 0x180   :  { %2212 = vmatpush1.bf16.msra.mxu0 %v3890_v0  ;;  %v3973_v0 = vld [vmem:[#allocation6 + $0x5f0] ss:$8 sps:$4 sm:$0xff]  }
 0x181   :  { %2213 = vmatprep.subr.bf16.mxu0 %v3895_v1  ;;  %v1647_v1 = vlaneseq }
 0x184   :  { %2214 = vmatpush1.bf16.msra.mxu0 %v3893_v2  ;;  %v1648_v2 = vshrl.u32 %v1647_v1, 7 }
 0x185   :  { %2215 = vmatprep.subr.bf16.mxu0 %v3898_v3 }
 0x186   :  { %vm1656_vm0 = vcmp.lt.s32.totalorder %v1648_v2, 2  ;;  %vm1671_vm1 = vcmp.lt.s32.totalorder %v1648_v2, 6  ;;  %vm1650_vm2 = vcmp.ge.s32.totalorder %v1648_v2, 2 }
 0x188   :  { %2216 = vmatpush1.bf16.msra.mxu0 %v3896_v4 }
 0x189   :  { %2217 = vmatprep.subr.bf16.mxu0 %v3901_v5 }
 0x18c   :  { %2218 = vmatpush1.bf16.msra.mxu0 %v3899_v6 }
 0x18d   :  { %2219 = vmatprep.subr.bf16.mxu0 %v3904_v7 }
 0x190   :  { %2220 = vmatpush1.bf16.msra.mxu0 %v3902_v8 }
 0x191   :  { %2221 = vmatprep.subr.bf16.mxu0 %v3907_v9 }
 0x194   :  { %2222 = vmatpush1.bf16.msra.mxu0 %v3905_v10 }
 0x195   :  { %2223 = vmatprep.subr.bf16.mxu0 %v3910_v11 }
 0x198   :  { %2224 = vmatpush1.bf16.msra.mxu0 %v3908_v12 }
 0x199   :  { %2225 = vmatprep.subr.bf16.mxu0 %v3913_v13 }
 0x19c   :  { %2226 = vmatpush1.bf16.msra.mxu0 %v3911_v14 }
 0x19d   :  { %2227 = vmatprep.subr.bf16.mxu0 %v3916_v15 }
 0x1a0   :  { %2228 = vmatpush1.bf16.msra.mxu0 %v3914_v16 }
 0x1a1   :  { %2229 = vmatprep.subr.bf16.mxu0 %v3919_v17 }
 0x1a4   :  { %2230 = vmatpush1.bf16.msra.mxu0 %v3917_v18 }
 0x1a5   :  { %2231 = vmatprep.subr.bf16.mxu0 %v3922_v19 }
 0x1a8   :  { %2232 = vmatpush1.bf16.msra.mxu0 %v3920_v20 }
 0x1a9   :  { %2233 = vmatprep.subr.bf16.mxu0 %v3925_v21 }
 0x1ac   :  { %2234 = vmatpush1.bf16.msra.mxu0 %v3923_v22 }
 0x1ad   :  { %2246 = vmatprep.subr.bf16.mxu0 %v3928_v23 }
 0x1af   :  { %2236 = vmatmul.mubr.bf16.vlgmr.msra.gmra.mrb[4].mxu0 %v4381_v59  ;;  %v3941_v59 = vld [vmem:[#allocation6 + $0x550] ss:$8 sps:$4 sm:$0xff]  }
 0x1b0   :  { %2247 = vmatpush1.bf16.msra.mxu0 %v3926_v24  ;;  %2278 = vmatprep.mubr.bf16.mxu0 %v4383_v62  ;;  %v3944_v62 = vld [vmem:[#allocation6 + $0x560] ss:$8 sps:$4 sm:$0xff]  }
 0x1b1   :  { %2248 = vmatprep.subr.bf16.mxu0 %v3931_v25 }
 0x1b4   :  { %2249 = vmatpush1.bf16.msra.mxu0 %v3929_v26 }
 0x1b5   :  { %2250 = vmatprep.subr.bf16.mxu0 %v3934_v27 }
 0x1b8   :  { %2251 = vmatpush1.bf16.msra.mxu0 %v3932_v28 }
 0x1b9   :  { %2252 = vmatprep.subr.bf16.mxu0 %v3937_v29 }
 0x1bc   :  { %2253 = vmatpush1.bf16.msra.mxu0 %v3935_v30  ;;  %v2297_v30 = vsub.s32 0, %v1648_v2 }
 0x1bd   :  { %2254 = vmatprep.subr.bf16.mxu0 %v3940_v31  ;;  %v1649_v31 = vadd.s32 8, %v1648_v2 }
 0x1bf   :  { %vm1666_vm3 = vcmp.lt.s32.totalorder %v1649_v31, 14 }
 0x1c0   :  { %2255 = vmatpush1.bf16.msra.mxu0 %v3938_v32  ;;  %v2293_v32 = vld [vmem:[#allocation8] sm:$0x3] }
 0x1c1   :  { %2256 = vmatprep.subr.bf16.mxu0 %v3943_v33  ;;  %v2301_v33 = vsub.s32 1, %v1648_v2 }
 0x1c4   :  { %2257 = vmatpush1.bf16.msra.mxu0 %v3941_v59 }
 0x1c5   :  { %2258 = vmatprep.subr.bf16.mxu0 %v3946_v34 }
 0x1c8   :  { %2259 = vmatpush1.bf16.msra.mxu0 %v3944_v62 }
 0x1c9   :  { %2260 = vmatprep.subr.bf16.mxu0 %v3949_v35  ;;  %v2298_v35 = vrot.slane %v2293_v32, %v2297_v30 }
 0x1cc   :  { %2261 = vmatpush1.bf16.msra.mxu0 %v3947_v36 }
 0x1cd   :  { %2262 = vmatprep.subr.bf16.mxu0 %v3952_v37 }
 0x1d0   :  { %2263 = vmatpush1.bf16.msra.mxu0 %v3950_v38 }
 0x1d1   :  { %2264 = vmatprep.subr.bf16.mxu0 %v3955_v39  ;;  %v2302_v39 = vrot.slane %v2293_v32, %v2301_v33 }
 0x1d4   :  { %2265 = vmatpush1.bf16.msra.mxu0 %v3953_v40 }
 0x1d5   :  { %2266 = vmatprep.subr.bf16.mxu0 %v3958_v42 }
 0x1d8   :  { %2267 = vmatpush1.bf16.msra.mxu0 %v3956_v44 }
 0x1d9   :  { %2268 = vmatprep.subr.bf16.mxu0 %v3961_v46 }
 0x1dc   :  { %2269 = vmatpush1.bf16.msra.mxu0 %v3959_v48 }
 0x1dd   :  { %2270 = vmatprep.subr.bf16.mxu0 %v3964_v51 }
 0x1e0   :  { %2271 = vmatpush1.bf16.msra.mxu0 %v3962_v52 }
 0x1e1   :  { %2272 = vmatprep.subr.bf16.mxu0 %v3967_v54 }
 0x1e4   :  { %2273 = vmatpush1.bf16.msra.mxu0 %v3965_v57 }
 0x1e5   :  { %2274 = vmatprep.subr.bf16.mxu0 %v3970_v58 }
 0x1e8   :  { %2275 = vmatpush1.bf16.msra.mxu0 %v3968_v60 }
 0x1e9   :  { %2276 = vmatprep.subr.bf16.mxu0 %v3975_v61 }
 0x1ec   :  { %2277 = vmatpush1.bf16.msra.mxu0 %v3973_v0 }
 0x1ef   :  { %2279 = vmatmul.mubr.bf16.vlgmr.msra.gmra.mrb[4].mxu0 %v4389_v63 }
 0x202   :  { %v835_v3 = vpop.f32.mrb[0].mxu0 }
 0x203   :  { %v837_v4 = vpop.f32.mrb[1].mxu0  ;;  %v1652_v6 = vrot.slane %v835_v3, 6 }
 0x204   :  { %v839_v5 = vpop.f32.mrb[2].mxu0  ;;  %v1653_v9 = vrot.slane %v837_v4, 6 }
 0x205   :  { %v1654_v7 = vrot.slane %v839_v5, 6  ;;  %v841_v8 = vpop.f32.mrb[3].mxu0 }
 0x206   :  { %v1655_v10 = vrot.slane %v841_v8, 6 }
 0x207   :  { %v1659_v11 = vsel %vm1656_vm0, %v1654_v7, %v1652_v6  ;;  %v1657_v12 = vsel %vm1656_vm0, %v1652_v6, %v1654_v7  ;;  %v1638_v15 = vpop.f32.mrb[0].mxu1 }
 0x208   :  { %v1660_v13 = vsel %vm1656_vm0, %v1655_v10, %v1653_v9  ;;  %v1658_v14 = vsel %vm1656_vm0, %v1653_v9, %v1655_v10  ;;  %v1667_v16 = vrot.slane %v1638_v15, 2  ;;  %v1640_v17 = vpop.f32.mrb[1].mxu1  ;;  %v1661_v59 = vsel %vm1650_vm2, %v1659_v11, 0.0 }
 0x209   :  { %v1668_v18 = vrot.slane %v1640_v17, 2  ;;  %v1642_v63 = vpop.f32.mrb[2].mxu1  ;;  %v1662_v36 = vsel %vm1650_vm2, %v1660_v13, 0.0 }
 0x20a   :  { %v1669_v19 = vrot.slane %v1642_v63, 2  ;;  %v1644_v20 = vpop.f32.mrb[3].mxu1 }
 0x20b   :  { %v1670_v21 = vrot.slane %v1644_v20, 2 }
 0x20c   :  { %v1672_v22 = vsel %vm1671_vm1, %v1667_v16, %v1669_v19  ;;  %v1674_v23 = vsel %vm1671_vm1, %v1669_v19, %v1667_v16 }
 0x20d   :  { %v1673_v24 = vsel %vm1671_vm1, %v1668_v18, %v1670_v21  ;;  %v1675_v25 = vsel %vm1671_vm1, %v1670_v21, %v1668_v18  ;;  %v1678_v51 = vsel %vm1666_vm3, %v1674_v23, 0.0 }
 0x20e   :  { %v1679_v58 = vsel %vm1666_vm3, %v1675_v25, 0.0 }
 0x217   :  { %v2401_v26 = vpop.f32.mrb[4].mxu1 }
 0x218   :  { %v2403_v27 = vpop.f32.mrb[5].mxu1 }
 0x219   :  { %v2405_v28 = vpop.f32.mrb[6].mxu1 }
 0x21a   :  { %v2406_v29 = vpop.f32.mrb[7].mxu1 }
 0x2c2   :  { %v2280_v34 = vpop.f32.mrb[4].mxu0 }
 0x2c3   :  { %v3489_v62 = vadd.f32 %v2280_v34, %v1661_v59  ;;  %v2282_v37 = vpop.f32.mrb[5].mxu0 }
 0x2c4   :  { %v3490_v38 = vadd.f32 %v2282_v37, %v1662_v36  ;;  %v2284_v40 = vpop.f32.mrb[6].mxu0 }
 0x2c5   :  { %v2289_v42 = vadd.f32 %v3489_v62, %v1672_v22  ;;  %v3491_v44 = vadd.f32 %v2284_v40, %v1657_v12  ;;  %v2286_v46 = vpop.f32.mrb[7].mxu0 }
 0x2c6   :  { %v2290_v48 = vadd.f32 %v3490_v38, %v1673_v24  ;;  %v3492_v52 = vadd.f32 %v2286_v46, %v1658_v14 }
 0x2c7   :  { %v2305_v54 = vadd.f32 %v2298_v35, %v2289_v42  ;;  %v2291_v57 = vadd.f32 %v3491_v44, %v1678_v51 }
 0x2c8   :  { %v2306_v60 = vadd.f32 %v2302_v39, %v2290_v48  ;;  %v2292_v61 = vadd.f32 %v3492_v52, %v1679_v58 }
 0x2c9   :  { %2309 = vst [vmem:[#allocation2] sm:$0xff] %v2305_v54  ;;  %v2307_v0 = vadd.f32 %v2298_v35, %v2291_v57 }
 0x2ca   :  { %2310 = vst [vmem:[#allocation2 + $0x8] sm:$0xff] %v2306_v60  ;;  %v2308_v1 = vadd.f32 %v2302_v39, %v2292_v61 }
 0x2cb   :  { %2311 = vst [vmem:[#allocation2 + $0x10] sm:$0xff] %v2307_v0 }
 0x2cc   :  { %2312 = vst [vmem:[#allocation2 + $0x18] sm:$0xff] %v2308_v1 }
 0x2d0   :  { %v2321_v2 = vld [vmem:[#allocation2] sm:$0x3]  ;;  %v2432_v25 = vld [vmem:[#allocation2] sm:$0xc]  ;;  %v2515_v0 = vld [vmem:[#allocation2] sm:$0x30] }
 0x2d1   :  { %v2408_v3 = vadd.f32 %v2401_v26, %v2321_v2  ;;  %v2322_v5 = vld [vmem:[#allocation2 + $0x8] sm:$0x3]  ;;  %v2433_v31 = vld [vmem:[#allocation2 + $0x8] sm:$0xc] }
 0x2d2   :  { %v2409_v6 = vadd.f32 %v2403_v27, %v2322_v5 }
 0x2d3   :  { %v3424_v4 = vmul.f32 -1.442695, %v2408_v3 }
 0x2d4   :  { %v3425_v12 = vmul.f32 -1.442695, %v2409_v6 }
 0x2d5   :  { %3986 = vpow2.f32 %v3424_v4 }
 0x2d6   :  { %3988 = vtanh.f32 %v2409_v6  ;;  %v2516_v6 = vld [vmem:[#allocation2 + $0x8] sm:$0x30] }
 0x2df   :  { %v3987_v7 = vpop.eup %3986 }
 0x2e0   :  { %v2413_v8 = vadd.f32 1.0, %v3987_v7  ;;  %v3989_v9 = vpop.eup %3988 }
 0x2e2   :  { %3990 = vrcp.f32 %v2413_v8 }
 0x2e3   :  { %3992 = vpow2.f32 %v3425_v12 }
 0x2ec   :  { %v3991_v10 = vpop.eup %3990 }
 0x2ed   :  { %v2424_v11 = vmul.f32 %v3991_v10, %v3989_v9  ;;  %v3993_v13 = vpop.eup %3992  ;;  %v2423_v15 = vmul.f32 0.0, %v3991_v10 }
 0x2ee   :  { %v2420_v14 = vadd.f32 1.0, %v3993_v13 }
 0x2ef   :  { %2426 = vrot.lane.b32.xlu0 %v2424_v11, %s4260_s5 }
 0x2f0   :  { %3994 = vrcp.f32 %v2420_v14 }
 0x2fa   :  { %v3995_v18 = vpop.eup %3994 }
 0x361   :  { %v2427_v16 = vpop.permute.xlu0 %2426 }
 0x362   :  { %v2429_v17 = vadd.f32 %v2427_v16, %v2423_v15 }
 0x364   :  { %3996 = vtanh.f32 %v2429_v17  ;;  %v2504_v62 = vrot.slane %v2429_v17, 6 }
 0x36e   :  { %v3997_v63 = vpop.eup %3996 }
 0x36f   :  { %v2431_v19 = vmul.f32 %v3997_v63, %v3995_v18 }
 0x371   :  { %v2434_v20 = vpack.c.bf16 %v2431_v19, %v2431_v19 }
 0x373   :  { %2436 = vrot.lane.b32.xlu0 %v2434_v20, %s4260_s5 }
 0x3e5   :  { %v2437_v21 = vpop.permute.xlu0 %2436 }
 0x3e6   :  { %3426 = vmatmul.mubr.msk.bf16.vlgmr.msra.gmra.mrb[8].mxu1 %vm2363_vm4, %v2437_v21 }
 0x3e7   :  { %2526 = vmatpush1.bf16.msra.mxu1 %v4395_v43  ;;  %2557 = vmatprep.mubr.bf16.mxu1 %v4259_v55 }
 0x3e8   :  { %2527 = vmatprep.subr.bf16.mxu1 %v4399_v45 }
 0x3eb   :  { %2528 = vmatpush1.bf16.msra.mxu1 %v4401_v47 }
 0x3ec   :  { %2529 = vmatprep.subr.bf16.mxu1 %v4405_v49 }
 0x3ef   :  { %2530 = vmatpush1.bf16.msra.mxu1 %v4407_v50 }
 0x3f0   :  { %2531 = vmatprep.subr.bf16.mxu1 %v4409_v53 }
 0x3f3   :  { %2532 = vmatpush1.bf16.msra.mxu1 %v4414_v56 }
 0x3f4   :  { %2609 = vmatprep.subr.bf16.mxu1 %v4393_v41 }
 0x4b9   :  { %v2475_v22 = vpop.f32.mrb[8].mxu1 }
 0x4ba   :  { %v2484_v23 = vrot.slane %v2475_v22, 6  ;;  %v2477_v24 = vpop.f32.mrb[9].mxu1 }
 0x4bb   :  { %v2479_v26 = vpop.f32.mrb[10].mxu1  ;;  %v2485_v30 = vrot.slane %v2477_v24, 6 }
 0x4bc   :  { %v2488_v27 = vadd.f32 %v2484_v23, %v2432_v25  ;;  %v2480_v28 = vpop.f32.mrb[11].mxu1 }
 0x4bd   :  { %v2489_v32 = vadd.f32 %v2485_v30, %v2433_v31  ;;  %v2599_v28 = vld [vmem:[#allocation2] sm:$0xc0] }
 0x4be   :  { %v3427_v29 = vmul.f32 -1.442695, %v2488_v27 }
 0x4bf   :  { %v3428_v38 = vmul.f32 -1.442695, %v2489_v32 }
 0x4c0   :  { %3998 = vpow2.f32 %v3427_v29 }
 0x4c1   :  { %4000 = vtanh.f32 %v2489_v32 }
 0x4ca   :  { %v3999_v33 = vpop.eup %3998 }
 0x4cb   :  { %v2493_v59 = vadd.f32 1.0, %v3999_v33  ;;  %v4001_v34 = vpop.eup %4000 }
 0x4cd   :  { %4002 = vrcp.f32 %v2493_v59  ;;  %v2600_v59 = vld [vmem:[#allocation2 + $0x8] sm:$0xc0] }
 0x4ce   :  { %4004 = vpow2.f32 %v3428_v38 }
 0x4d7   :  { %v4003_v35 = vpop.eup %4002 }
 0x4d8   :  { %v2507_v36 = vmul.f32 %v4003_v35, %v4001_v34  ;;  %v2506_v37 = vmul.f32 %v4003_v35, %v2504_v62  ;;  %v4005_v39 = vpop.eup %4004 }
 0x4d9   :  { %v2500_v40 = vadd.f32 1.0, %v4005_v39 }
 0x4da   :  { %2509 = vrot.lane.b32.xlu1 %v2507_v36, %s4260_s5 }
 0x4db   :  { %4006 = vrcp.f32 %v2500_v40 }
 0x4e5   :  { %v4007_v46 = vpop.eup %4006 }
 0x54c   :  { %v2510_v42 = vpop.permute.xlu1 %2509 }
 0x54d   :  { %v2512_v44 = vadd.f32 %v2510_v42, %v2506_v37 }
 0x54f   :  { %4008 = vtanh.f32 %v2512_v44  ;;  %v2588_v11 = vrot.slane %v2512_v44, 6 }
 0x559   :  { %v4009_v48 = vpop.eup %4008 }
 0x55a   :  { %v2514_v51 = vmul.f32 %v4009_v48, %v4007_v46 }
 0x55c   :  { %v2517_v52 = vpack.c.bf16 %v2514_v51, %v2514_v51 }
 0x55e   :  { %v2519_v54 = vrot.slane %v2517_v52, 1 }
 0x560   :  { %2520 = vrot.lane.b32.xlu1 %v2519_v54, %s4260_s5 }
 0x5d2   :  { %v2521_v57 = vpop.permute.xlu1 %2520 }
 0x5d3   :  { %3429 = vmatmul.mubr.msk.bf16.vlgmr.msra.gmra.mrb[12].mxu1 %vm2363_vm4, %v2521_v57 }
 0x5d4   :  { %2610 = vmatpush1.bf16.msra.mxu1 %v4395_v43  ;;  %2641 = vmatprep.mubr.bf16.mxu1 %v4259_v55 }
 0x5d5   :  { %2611 = vmatprep.subr.bf16.mxu1 %v4399_v45 }
 0x5d8   :  { %2612 = vmatpush1.bf16.msra.mxu1 %v4401_v47 }
 0x5d9   :  { %2613 = vmatprep.subr.bf16.mxu1 %v4405_v49 }
 0x5dc   :  { %2614 = vmatpush1.bf16.msra.mxu1 %v4407_v50 }
 0x5dd   :  { %2615 = vmatprep.subr.bf16.mxu1 %v4409_v53 }
 0x5e0   :  { %2616 = vmatpush1.bf16.msra.mxu1 %v4414_v56 }
 0x5e1   :  { %2693 = vmatprep.subr.bf16.mxu1 %v4393_v41 }
 0x6a6   :  { %v2559_v58 = vpop.f32.mrb[12].mxu1 }
 0x6a7   :  { %v2568_v60 = vrot.slane %v2559_v58, 4  ;;  %v2561_v61 = vpop.f32.mrb[13].mxu1 }
 0x6a8   :  { %v2563_v1 = vpop.f32.mrb[14].mxu1  ;;  %v2569_v5 = vrot.slane %v2561_v61, 4 }
 0x6a9   :  { %v2572_v2 = vadd.f32 %v2568_v60, %v2515_v0  ;;  %v2564_v3 = vpop.f32.mrb[15].mxu1  ;;  %v2683_v0 = vld [vmem:[#allocation2 + $0x10] sm:$0x3] }
 0x6aa   :  { %v2573_v7 = vadd.f32 %v2569_v5, %v2516_v6 }
 0x6ab   :  { %v3430_v4 = vmul.f32 -1.442695, %v2572_v2 }
 0x6ac   :  { %v3431_v15 = vmul.f32 -1.442695, %v2573_v7 }
 0x6ad   :  { %4010 = vpow2.f32 %v3430_v4 }
 0x6ae   :  { %4012 = vtanh.f32 %v2573_v7  ;;  %v2684_v7 = vld [vmem:[#allocation2 + $0x18] sm:$0x3] }
 0x6b7   :  { %v4011_v8 = vpop.eup %4010 }
 0x6b8   :  { %v2577_v9 = vadd.f32 1.0, %v4011_v8  ;;  %v4013_v10 = vpop.eup %4012 }
 0x6ba   :  { %4014 = vrcp.f32 %v2577_v9 }
 0x6bb   :  { %4016 = vpow2.f32 %v3431_v15 }
 0x6c4   :  { %v4015_v12 = vpop.eup %4014 }
 0x6c5   :  { %v2591_v13 = vmul.f32 %v4015_v12, %v4013_v10  ;;  %v2590_v14 = vmul.f32 %v4015_v12, %v2588_v11  ;;  %v4017_v16 = vpop.eup %4016 }
 0x6c6   :  { %v2584_v17 = vadd.f32 1.0, %v4017_v16 }
 0x6c7   :  { %2593 = vrot.lane.b32.xlu0 %v2591_v13, %s4260_s5 }
 0x6c8   :  { %4018 = vrcp.f32 %v2584_v17 }
 0x6d2   :  { %v4019_v19 = vpop.eup %4018 }
 0x739   :  { %v2594_v18 = vpop.permute.xlu0 %2593 }
 0x73a   :  { %v2596_v63 = vadd.f32 %v2594_v18, %v2590_v14 }
 0x73c   :  { %4020 = vtanh.f32 %v2596_v63  ;;  %v2672_v37 = vrot.slane %v2596_v63, 6 }
 0x746   :  { %v4021_v20 = vpop.eup %4020 }
 0x747   :  { %v2598_v21 = vmul.f32 %v4021_v20, %v4019_v19 }
 0x749   :  { %v2601_v22 = vpack.c.bf16 %v2598_v21, %v2598_v21 }
 0x74b   :  { %v2603_v23 = vrot.slane %v2601_v22, 2 }
 0x74d   :  { %2604 = vrot.lane.b32.xlu1 %v2603_v23, %s4260_s5 }
 0x7bf   :  { %v2605_v24 = vpop.permute.xlu1 %2604 }
 0x7c0   :  { %3432 = vmatmul.mubr.msk.bf16.vlgmr.msra.gmra.mrb[16].mxu1 %vm2363_vm4, %v2605_v24 }
 0x7c1   :  { %2694 = vmatpush1.bf16.msra.mxu1 %v4395_v43  ;;  %2725 = vmatprep.mubr.bf16.mxu1 %v4259_v55 }
 0x7c2   :  { %2695 = vmatprep.subr.bf16.mxu1 %v4399_v45 }
 0x7c5   :  { %2696 = vmatpush1.bf16.msra.mxu1 %v4401_v47 }
 0x7c6   :  { %2697 = vmatprep.subr.bf16.mxu1 %v4405_v49 }
 0x7c9   :  { %2698 = vmatpush1.bf16.msra.mxu1 %v4407_v50 }
 0x7ca   :  { %2699 = vmatprep.subr.bf16.mxu1 %v4409_v53 }
 0x7cd   :  { %2700 = vmatpush1.bf16.msra.mxu1 %v4414_v56 }
 0x7ce   :  { %2770 = vmatprep.subr.bf16.mxu1 %v4393_v41 }
 0x893   :  { %v2643_v25 = vpop.f32.mrb[16].mxu1 }
 0x894   :  { %v2652_v26 = vrot.slane %v2643_v25, 2  ;;  %v2645_v27 = vpop.f32.mrb[17].mxu1 }
 0x895   :  { %v2647_v29 = vpop.f32.mrb[18].mxu1  ;;  %v2653_v33 = vrot.slane %v2645_v27, 2 }
 0x896   :  { %v2656_v30 = vadd.f32 %v2652_v26, %v2599_v28  ;;  %v2648_v31 = vpop.f32.mrb[19].mxu1  ;;  %v2761_v28 = vld [vmem:[#allocation2 + $0x10] sm:$0xc] }
 0x897   :  { %v2657_v34 = vadd.f32 %v2653_v33, %v2600_v59  ;;  %v2762_v59 = vld [vmem:[#allocation2 + $0x18] sm:$0xc] }
 0x898   :  { %v3433_v32 = vmul.f32 -1.442695, %v2656_v30 }
 0x899   :  { %v3434_v42 = vmul.f32 -1.442695, %v2657_v34 }
 0x89a   :  { %4022 = vpow2.f32 %v3433_v32 }
 0x89b   :  { %4024 = vtanh.f32 %v2657_v34 }
 0x8a4   :  { %v4023_v62 = vpop.eup %4022 }
 0x8a5   :  { %v2661_v35 = vadd.f32 1.0, %v4023_v62  ;;  %v4025_v36 = vpop.eup %4024 }
 0x8a7   :  { %4026 = vrcp.f32 %v2661_v35 }
 0x8a8   :  { %4028 = vpow2.f32 %v3434_v42 }
 0x8b1   :  { %v4027_v38 = vpop.eup %4026 }
 0x8b2   :  { %v2675_v39 = vmul.f32 %v4027_v38, %v4025_v36  ;;  %v2674_v40 = vmul.f32 %v4027_v38, %v2672_v37  ;;  %v4029_v44 = vpop.eup %4028 }
 0x8b3   :  { %v2668_v46 = vadd.f32 1.0, %v4029_v44 }
 0x8b4   :  { %2677 = vrot.lane.b32.xlu0 %v2675_v39, %s4260_s5 }
 0x8b5   :  { %4030 = vrcp.f32 %v2668_v46 }
 0x8bf   :  { %v4031_v52 = vpop.eup %4030 }
 0x926   :  { %v2678_v48 = vpop.permute.xlu0 %2677 }
 0x927   :  { %v2680_v51 = vadd.f32 %v2678_v48, %v2674_v40 }
 0x929   :  { %4032 = vtanh.f32 %v2680_v51  ;;  %v2750_v12 = vrot.slane %v2680_v51, 6 }
 0x933   :  { %v4033_v54 = vpop.eup %4032 }
 0x934   :  { %v2682_v57 = vmul.f32 %v4033_v54, %v4031_v52 }
 0x936   :  { %v2685_v58 = vpack.c.bf16 %v2682_v57, %v2682_v57 }
 0x938   :  { %v2687_v60 = vrot.slane %v2685_v58, 3 }
 0x93a   :  { %2688 = vrot.lane.b32.xlu1 %v2687_v60, %s4260_s5 }
 0x9ac   :  { %v2689_v61 = vpop.permute.xlu1 %2688 }
 0x9ad   :  { %3435 = vmatmul.mubr.msk.bf16.vlgmr.msra.gmra.mrb[20].mxu1 %vm2363_vm4, %v2689_v61 }
 0x9ae   :  { %2771 = vmatpush1.bf16.msra.mxu1 %v4395_v43  ;;  %2802 = vmatprep.mubr.bf16.mxu1 %v4259_v55 }
 0x9af   :  { %2772 = vmatprep.subr.bf16.mxu1 %v4399_v45 }
 0x9b2   :  { %2773 = vmatpush1.bf16.msra.mxu1 %v4401_v47 }
 0x9b3   :  { %2774 = vmatprep.subr.bf16.mxu1 %v4405_v49 }
 0x9b6   :  { %2775 = vmatpush1.bf16.msra.mxu1 %v4407_v50 }
 0x9b7   :  { %2776 = vmatprep.subr.bf16.mxu1 %v4409_v53 }
 0x9ba   :  { %2777 = vmatpush1.bf16.msra.mxu1 %v4414_v56 }
 0x9bb   :  { %2854 = vmatprep.subr.bf16.mxu1 %v4393_v41 }
 0xa80   :  { %v2727_v1 = vpop.f32.mrb[20].mxu1 }
 0xa81   :  { %v2734_v2 = vadd.f32 %v2727_v1, %v2683_v0  ;;  %v2729_v3 = vpop.f32.mrb[21].mxu1 }
 0xa82   :  { %v2731_v4 = vpop.f32.mrb[22].mxu1  ;;  %v2735_v8 = vadd.f32 %v2729_v3, %v2684_v7 }
 0xa83   :  { %v3436_v5 = vmul.f32 -1.442695, %v2734_v2  ;;  %v2732_v6 = vpop.f32.mrb[23].mxu1  ;;  %v2844_v2 = vld [vmem:[#allocation2 + $0x10] sm:$0x30] }
 0xa84   :  { %v3437_v16 = vmul.f32 -1.442695, %v2735_v8 }
 0xa85   :  { %4034 = vpow2.f32 %v3436_v5  ;;  %v2845_v5 = vld [vmem:[#allocation2 + $0x18] sm:$0x30] }
 0xa86   :  { %4036 = vtanh.f32 %v2735_v8 }
 0xa8f   :  { %v4035_v9 = vpop.eup %4034 }
 0xa90   :  { %v2739_v10 = vadd.f32 1.0, %v4035_v9  ;;  %v4037_v11 = vpop.eup %4036 }
 0xa92   :  { %4038 = vrcp.f32 %v2739_v10 }
 0xa93   :  { %4040 = vpow2.f32 %v3437_v16 }
 0xa9c   :  { %v4039_v13 = vpop.eup %4038 }
 0xa9d   :  { %v2753_v14 = vmul.f32 %v4039_v13, %v4037_v11  ;;  %v2752_v15 = vmul.f32 %v4039_v13, %v2750_v12  ;;  %v4041_v17 = vpop.eup %4040 }
 0xa9e   :  { %v2746_v18 = vadd.f32 1.0, %v4041_v17 }
 0xa9f   :  { %2755 = vrot.lane.b32.xlu0 %v2753_v14, %s4260_s5 }
 0xaa0   :  { %4042 = vrcp.f32 %v2746_v18 }
 0xaaa   :  { %v4043_v20 = vpop.eup %4042 }
 0xb11   :  { %v2756_v63 = vpop.permute.xlu0 %2755 }
 0xb12   :  { %v2758_v19 = vadd.f32 %v2756_v63, %v2752_v15 }
 0xb14   :  { %4044 = vtanh.f32 %v2758_v19  ;;  %v2833_v37 = vrot.slane %v2758_v19, 6 }
 0xb1e   :  { %v4045_v21 = vpop.eup %4044 }
 0xb1f   :  { %v2760_v22 = vmul.f32 %v4045_v21, %v4043_v20 }
 0xb21   :  { %v2763_v23 = vpack.c.bf16 %v2760_v22, %v2760_v22  ;;  %v2928_v22 = vld [vmem:[#allocation2 + $0x10] sm:$0xc0] }
 0xb23   :  { %2765 = vrot.lane.b32.xlu1 %v2763_v23, %s4260_s5 }
 0xb95   :  { %v2766_v24 = vpop.permute.xlu1 %2765 }
 0xb96   :  { %3438 = vmatmul.mubr.msk.bf16.vlgmr.msra.gmra.mrb[24].mxu1 %vm2363_vm4, %v2766_v24 }
 0xb97   :  { %2855 = vmatpush1.bf16.msra.mxu1 %v4395_v43  ;;  %2886 = vmatprep.mubr.bf16.mxu1 %v4259_v55 }
 0xb98   :  { %2856 = vmatprep.subr.bf16.mxu1 %v4399_v45 }
 0xb9b   :  { %2857 = vmatpush1.bf16.msra.mxu1 %v4401_v47 }
 0xb9c   :  { %2858 = vmatprep.subr.bf16.mxu1 %v4405_v49 }
 0xb9f   :  { %2859 = vmatpush1.bf16.msra.mxu1 %v4407_v50 }
 0xba0   :  { %2860 = vmatprep.subr.bf16.mxu1 %v4409_v53 }
 0xba3   :  { %2861 = vmatpush1.bf16.msra.mxu1 %v4414_v56 }
 0xba4   :  { %2938 = vmatprep.subr.bf16.mxu1 %v4393_v41 }
 0xc69   :  { %v2804_v25 = vpop.f32.mrb[24].mxu1 }
 0xc6a   :  { %v2813_v26 = vrot.slane %v2804_v25, 6  ;;  %v2806_v27 = vpop.f32.mrb[25].mxu1 }
 0xc6b   :  { %v2808_v29 = vpop.f32.mrb[26].mxu1  ;;  %v2814_v33 = vrot.slane %v2806_v27, 6 }
 0xc6c   :  { %v2817_v30 = vadd.f32 %v2813_v26, %v2761_v28  ;;  %v2809_v31 = vpop.f32.mrb[27].mxu1  ;;  %v2929_v28 = vld [vmem:[#allocation2 + $0x18] sm:$0xc0] }
 0xc6d   :  { %v2818_v34 = vadd.f32 %v2814_v33, %v2762_v59 }
 0xc6e   :  { %v3439_v32 = vmul.f32 -1.442695, %v2817_v30 }
 0xc6f   :  { %v3440_v40 = vmul.f32 -1.442695, %v2818_v34 }
 0xc70   :  { %4046 = vpow2.f32 %v3439_v32 }
 0xc71   :  { %4048 = vtanh.f32 %v2818_v34 }
 0xc7a   :  { %v4047_v62 = vpop.eup %4046 }
 0xc7b   :  { %v2822_v35 = vadd.f32 1.0, %v4047_v62  ;;  %v4049_v36 = vpop.eup %4048 }
 0xc7d   :  { %4050 = vrcp.f32 %v2822_v35  ;;  %v3012_v35 = vld [vmem:[#allocation11] sm:$0xff] }
 0xc7e   :  { %4052 = vpow2.f32 %v3440_v40  ;;  %v4263_v40 = vmov 0.0  }
 0xc87   :  { %v4051_v38 = vpop.eup %4050 }
 0xc88   :  { %v2836_v41 = vmul.f32 %v4051_v38, %v4049_v36  ;;  %v2835_v39 = vmul.f32 %v4051_v38, %v2833_v37  ;;  %v4053_v42 = vpop.eup %4052  ;;  %v3013_v36 = vld [vmem:[#allocation11 + $0x8] sm:$0xff]  ;;  %v3014_v37 = vld [vmem:[#allocation11 + $0x10] sm:$0xff]  ;;  %v4261_v38 = vmov 0.0|0.0  }
 0xc89   :  { %v2829_v44 = vadd.f32 1.0, %v4053_v42 }
 0xc8a   :  { %2838 = vrot.lane.b32.xlu0 %v2836_v41, %s4260_s5  ;;  %v3478_v41 = vpack.c.bf16 %v3013_v36, %v3012_v35 }
 0xc8b   :  { %4054 = vrcp.f32 %v2829_v44  ;;  %v3016_v44 = vld [vmem:[#allocation11 + $0x20] sm:$0xff] }
 0xc95   :  { %v4055_v51 = vpop.eup %4054 }
 0xcfc   :  { %v2839_v46 = vpop.permute.xlu0 %2838 }
 0xcfd   :  { %v2841_v48 = vadd.f32 %v2839_v46, %v2835_v39  ;;  %v3015_v39 = vld [vmem:[#allocation11 + $0x18] sm:$0xff]  ;;  %v3017_v46 = vld [vmem:[#allocation11 + $0x28] sm:$0xff] }
 0xcfe   :  { %v3481_v42 = vpack.c.bf16 %v3015_v39, %v3014_v37 }
 0xcff   :  { %4056 = vtanh.f32 %v2841_v48 }
 0xd09   :  { %v4057_v52 = vpop.eup %4056 }
 0xd0a   :  { %v2843_v54 = vmul.f32 %v4057_v52, %v4055_v51  ;;  %v3018_v51 = vld [vmem:[#allocation11 + $0x30] sm:$0xff]  ;;  %v3019_v52 = vld [vmem:[#allocation11 + $0x38] sm:$0xff] }
 0xd0c   :  { %v2846_v57 = vpack.c.bf16 %v2843_v54, %v2843_v54  ;;  %v3487_v54 = vpack.c.bf16 %v3019_v52, %v3018_v51 }
 0xd0e   :  { %v2848_v58 = vrot.slane %v2846_v57, 1 }
 0xd10   :  { %2849 = vrot.lane.b32.xlu1 %v2848_v58, %s4260_s5 }
 0xd82   :  { %v2850_v60 = vpop.permute.xlu1 %2849 }
 0xd83   :  { %3441 = vmatmul.mubr.msk.bf16.vlgmr.msra.gmra.mrb[28].mxu1 %vm2363_vm4, %v2850_v60 }
 0xd84   :  { %2939 = vmatpush1.bf16.msra.mxu1 %v4395_v43  ;;  %2970 = vmatprep.mubr.bf16.mxu1 %v4259_v55 }
 0xd85   :  { %2940 = vmatprep.subr.bf16.mxu1 %v4399_v45 }
 0xd88   :  { %2941 = vmatpush1.bf16.msra.mxu1 %v4401_v47 }
 0xd89   :  { %2942 = vmatprep.subr.bf16.mxu1 %v4405_v49 }
 0xd8c   :  { %2943 = vmatpush1.bf16.msra.mxu1 %v4407_v50 }
 0xd8d   :  { %2944 = vmatprep.subr.bf16.mxu1 %v4409_v53  ;;  %v2917_v53 = vrot.slane %v2841_v48, 6  ;;  %v3484_v48 = vpack.c.bf16 %v3017_v46, %v3016_v44 }
 0xd90   :  { %2945 = vmatpush1.bf16.msra.mxu1 %v4414_v56 }
 0xd91   :  { %3477 = vmatprep.subr.bf16.mxu1 %v4261_v38 }
 0xe56   :  { %v2888_v61 = vpop.f32.mrb[28].mxu1 }
 0xe57   :  { %v2897_v0 = vrot.slane %v2888_v61, 4  ;;  %v2890_v1 = vpop.f32.mrb[29].mxu1 }
 0xe58   :  { %v2892_v3 = vpop.f32.mrb[30].mxu1  ;;  %v2898_v45 = vrot.slane %v2890_v1, 4 }
 0xe59   :  { %v2901_v43 = vadd.f32 %v2897_v0, %v2844_v2  ;;  %v2893_v4 = vpop.f32.mrb[31].mxu1 }
 0xe5a   :  { %v2902_v47 = vadd.f32 %v2898_v45, %v2845_v5 }
 0xe5b   :  { %v3442_v55 = vmul.f32 -1.442695, %v2901_v43 }
 0xe5c   :  { %v3443_v9 = vmul.f32 -1.442695, %v2902_v47 }
 0xe5d   :  { %4058 = vpow2.f32 %v3442_v55  ;;  %v3447_v55 = vld [vmem:[#allocation12] ss:$0 sm:$0xff] }
 0xe5e   :  { %4060 = vtanh.f32 %v2902_v47 }
 0xe67   :  { %v4059_v6 = vpop.eup %4058 }
 0xe68   :  { %v2906_v49 = vadd.f32 1.0, %v4059_v6  ;;  %v4061_v50 = vpop.eup %4060 }
 0xe6a   :  { %4062 = vrcp.f32 %v2906_v49 }
 0xe6b   :  { %4064 = vpow2.f32 %v3443_v9 }
 0xe74   :  { %v4063_v7 = vpop.eup %4062 }
 0xe75   :  { %v2920_v56 = vmul.f32 %v4063_v7, %v4061_v50  ;;  %v2919_v8 = vmul.f32 %v4063_v7, %v2917_v53  ;;  %v4065_v10 = vpop.eup %4064 }
 0xe76   :  { %v2913_v11 = vadd.f32 1.0, %v4065_v10 }
 0xe77   :  { %2922 = vrot.lane.b32.xlu0 %v2920_v56, %s4260_s5 }
 0xe78   :  { %4066 = vrcp.f32 %v2913_v11 }
 0xe82   :  { %v4067_v14 = vpop.eup %4066 }
 0xee9   :  { %v2923_v12 = vpop.permute.xlu0 %2922 }
 0xeea   :  { %v2925_v13 = vadd.f32 %v2923_v12, %v2919_v8 }
 0xeec   :  { %4068 = vtanh.f32 %v2925_v13  ;;  %v3001_v33 = vrot.slane %v2925_v13, 6 }
 0xef6   :  { %v4069_v15 = vpop.eup %4068 }
 0xef7   :  { %v2927_v16 = vmul.f32 %v4069_v15, %v4067_v14 }
 0xef9   :  { %v2930_v17 = vpack.c.bf16 %v2927_v16, %v2927_v16 }
 0xefb   :  { %v2932_v18 = vrot.slane %v2930_v17, 2 }
 0xefd   :  { %2933 = vrot.lane.b32.xlu1 %v2932_v18, %s4260_s5 }
 0xf6f   :  { %v2934_v63 = vpop.permute.xlu1 %2933 }
 0xf70   :  { %3444 = vmatmul.mubr.msk.bf16.vlgmr.msra.gmra.mrb[32].mxu1 %vm2363_vm4, %v2934_v63 }
 0xf71   :  { %3474 = vmatprep.mubr.msk.f32.mxu1 %vm4262_vm5, %v4263_v40  ;;  %3479 = vmatpush3.bf16.msra.mxu1 %v3478_v41 }
 0xf72   :  { %3480 = vmatprep.subr.bf16.mxu1 %v4261_v38 }
 0xf75   :  { %3482 = vmatpush3.bf16.msra.mxu1 %v3481_v42 }
 0xf76   :  { %3483 = vmatprep.subr.bf16.mxu1 %v4261_v38 }
 0xf79   :  { %3485 = vmatpush3.bf16.msra.mxu1 %v3484_v48 }
 0xf7a   :  { %3486 = vmatprep.subr.bf16.mxu1 %v4261_v38 }
 0xf7d   :  { %3488 = vmatpush3.bf16.msra.mxu1 %v3487_v54 }
0x1043   :  { %v2972_v19 = vpop.f32.mrb[32].mxu1 }
0x1044   :  { %v2981_v20 = vrot.slane %v2972_v19, 2  ;;  %v2974_v21 = vpop.f32.mrb[33].mxu1 }
0x1045   :  { %v2976_v23 = vpop.f32.mrb[34].mxu1  ;;  %v2982_v27 = vrot.slane %v2974_v21, 2 }
0x1046   :  { %v2985_v24 = vadd.f32 %v2981_v20, %v2928_v22  ;;  %v2977_v25 = vpop.f32.mrb[35].mxu1 }
0x1047   :  { %v2986_v29 = vadd.f32 %v2982_v27, %v2929_v28 }
0x1048   :  { %v3445_v26 = vmul.f32 -1.442695, %v2985_v24 }
0x1049   :  { %v3446_v57 = vmul.f32 -1.442695, %v2986_v29 }
0x104a   :  { %4070 = vpow2.f32 %v3445_v26 }
0x104b   :  { %4072 = vtanh.f32 %v2986_v29 }
0x1054   :  { %v4071_v30 = vpop.eup %4070 }
0x1055   :  { %v2990_v31 = vadd.f32 1.0, %v4071_v30  ;;  %v4073_v32 = vpop.eup %4072 }
0x1057   :  { %4074 = vrcp.f32 %v2990_v31 }
0x1058   :  { %4076 = vpow2.f32 %v3446_v57 }
0x1061   :  { %v4075_v59 = vpop.eup %4074 }
0x1062   :  { %v3004_v34 = vmul.f32 %v4075_v59, %v4073_v32  ;;  %v3003_v62 = vmul.f32 %v4075_v59, %v3001_v33  ;;  %v4077_v58 = vpop.eup %4076 }
0x1063   :  { %v2997_v60 = vadd.f32 1.0, %v4077_v58 }
0x1064   :  { %3006 = vrot.lane.b32.xlu0 %v3004_v34, %s4260_s5 }
0x1065   :  { %4078 = vrcp.f32 %v2997_v60 }
0x106f   :  { %v4079_v1 = vpop.eup %4078 }
0x10d6   :  { %v3007_v61 = vpop.permute.xlu0 %3006 }
0x10d7   :  { %v3009_v0 = vadd.f32 %v3007_v61, %v3003_v62 }
0x10d9   :  { %4080 = vtanh.f32 %v3009_v0 }
0x10e3   :  { %v4081_v2 = vpop.eup %4080 }
0x10e4   :  { %v3011_v3 = vmul.f32 %v4081_v2, %v4079_v1 }
0x10e6   :  { %v3028_v43 = vrot.slane %v3011_v3, 6 }
0x10e8   :  { %3029 = vrot.lane.b32.xlu1 %v3028_v43, %s4260_s5 }
0x115a   :  { %v3030_v4 = vpop.permute.xlu1 %3029 }
0x115b   :  { %3475 = vmatmul.mubr.msk.f32.vlgmr.msra.gmra.mrb[36].mxu1 %vm2363_vm4, %v3030_v4 }
0x122e   :  { %v3099_v45 = vpop.f32.mrb[36].mxu1 }
0x122f   :  { %v3100_v5 = vadd.f32 %v3447_v55, %v3099_v45  ;;  %v3476_v47 = vpop.f32.mrb[37].mxu1 }
0x1231   :  { %3103 = vst [vmem:[#allocation14] sm:$0x3] %v3100_v5 }
0x1232   :  { %4228 = shalt.err (!%p4225_p10)
}
0x1233   :  { %s4229_s24 = scalar_lea.hbm %s4527_s6, 32 }
0x1234   :  { %p4230_p11 = scmp.ne.s32.totalorder %s4527_s6, %s4229_s24  ;;  %p4233_p12 = scmp.lt.u32.totalorder %s4229_s24, %s4527_s6 }
0x1236   :  { %p4235_p13 = pnand %p4233_p12, %p4230_p11 }
0x1238   :  { %4238 = shalt.err (!%p4235_p13)
}
0x1239   :  { %3113 = dma.vmem_to_hbm [thread:$0]  %s3111_s22, 32, %s4527_s6, [#allocation5]  }
0x123a   :  { %4247 = dma.done.wait [#allocation5], 32  }
0x123b   :  { %4248 = vsyncadd [#allocation5], 4294967264 }
0x123c   :  { %3117 = vsyncpa [#allocation4], 1 }
0x123d   :  { %3118 = vsyncpa [#allocation7], 1 }
0x123e   :  { %3119 = vsyncpa [#allocation10], 1 }
0x123f   :  { %3120 = vsyncpa [#allocation13], 1 }
0x1240   :  { %3121 = vsyncpa [#allocation5], 1 }

</bundles_post_ra>
